<compile_context>
chip_gen: v7x
topology: tpu7x:2x2x1
jax: 0.10.0
libtpu: 0.0.40
codegen_flags: <defaults>
</compile_context>

<pallas_src>
import functools

import jax
import jax.numpy as jnp
from jax.experimental import pallas as pl
from jax.experimental.pallas import tpu as pltpu


def _round_up(x, m):
    return ((x + m - 1) // m) * m


def _pick_divisor_tile(total, want, base=128):
    """Largest multiple of `base` that divides `total` and is <= want."""
    want = max(base, (want // base) * base)
    if total <= want:
        return total
    best = base
    d = base
    while d <= want:
        if total % d == 0:
            best = d
        d += base
    return best


def _auto_vmem_limit(tm_g, tm_r, ti, H, E, x_itemsize, w_itemsize):
    weight_tiles = 3 * 2 * H * ti * w_itemsize          # wg/wu/wd, double-buffered
    act_tiles = 2 * 2 * max(tm_g, tm_r) * H * x_itemsize  # x in + out, double-buffered
    acc = tm_g * H * 4                                   # f32 accumulator scratch
    router = 2 * H * E * w_itemsize + 2 * tm_r * E * x_itemsize
    est = int(1.2 * (weight_tiles + act_tiles + acc + router)) + (2 << 20)
    return max(32 << 20, min(est, 112 << 20))


# --------------------------------------------------------------------------
# Router kernel: logits = x @ Wr, keep top-k per token (torch.topk-style
# lowest-index tie break), sigmoid -> dense scores (zeros elsewhere).
# --------------------------------------------------------------------------
def _router_kernel(x_ref, wr_ref, scores_ref, *, top_k, num_experts):
    x = x_ref[...]
    logits = jnp.dot(x, wr_ref[...], preferred_element_type=jnp.float32)  # (tm, E)
    col = jax.lax.broadcasted_iota(jnp.int32, logits.shape, 1)
    masked = logits
    keep = jnp.zeros(logits.shape, dtype=jnp.bool_)
    for _ in range(top_k):                       # small static int -> unrolled
        m = jnp.max(masked, axis=-1, keepdims=True)
        is_max = masked == m
        first_idx = jnp.min(jnp.where(is_max, col, num_experts),
                            axis=-1, keepdims=True)
        sel = col == first_idx
        keep = jnp.logical_or(keep, sel)
        masked = jnp.where(sel, -jnp.inf, masked)
    scores_ref[...] = jnp.where(keep, jax.nn.sigmoid(logits), 0.0).astype(
        scores_ref.dtype)


# --------------------------------------------------------------------------
# Grouped SwiGLU kernel.  Grid = (group-token tile m, intermediate tile k).
# Weight tiles for tile m are selected by the scalar-prefetched group-id
# table.  Rows of x are already scaled by their routing score (pad rows = 0).
# --------------------------------------------------------------------------
def _grouped_swiglu_kernel(gid_ref, nvalid_ref, x_ref, wg_ref, wu_ref, wd_ref,
                           o_ref, acc_ref):
    del gid_ref  # used only inside the index_maps
    k = pl.program_id(1)
    n_k = pl.num_programs(1)

    @pl.when(k == 0)
    def _init():
        acc_ref[...] = jnp.zeros_like(acc_ref)

    @pl.when(pl.program_id(0) < nvalid_ref[0])
    def _compute():
        x = x_ref[...]
        g = jnp.dot(x, wg_ref[...], preferred_element_type=jnp.float32)
        u = jnp.dot(x, wu_ref[...], preferred_element_type=jnp.float32)
        h = (g * jax.nn.sigmoid(g)) * u                 # SiLU(gate) * up
        acc_ref[...] += jnp.dot(h.astype(wd_ref.dtype), wd_ref[...],
                                preferred_element_type=jnp.float32)

    @pl.when(k == n_k - 1)
    def _finalize():
        o_ref[...] = acc_ref[...].astype(o_ref.dtype)


# --------------------------------------------------------------------------
# One-time load-time weight preparation (NOT on the per-forward path).
# --------------------------------------------------------------------------
def prepare_llama4_moe_weights(router_w, gate_up_proj, down_proj,
                               shared_gate_w, shared_up_w, shared_down_w,
                               *, i_pad_multiple=512, param_dtype=None):
    """router_w: (E, H); gate_up_proj: (E, H, 2I); down_proj: (E, I, H);
    shared_*: torch Linear layouts.  Returns (wr_t (H,E),
    gu_all (E+1, H, 2*I_pad), dn_all (E+1, I_pad, H)) with the shared expert
    appended as the last 'expert' and the intermediate dim zero-padded to a
    lane-aligned multiple so the kernel can tile it cleanly."""
    i_pad_multiple = _round_up(max(i_pad_multiple, 128), 128)
    gate_up_proj = jnp.asarray(gate_up_proj)
    down_proj = jnp.asarray(down_proj)
    E, H, twoI = gate_up_proj.shape
    I = twoI // 2
    sg = jnp.asarray(shared_gate_w).T      # (H, Is)
    su = jnp.asarray(shared_up_w).T        # (H, Is)
    sd = jnp.asarray(shared_down_w).T      # (Is, H)
    Is = sg.shape[1]
    # TODO(synk): if the shared expert uses a much larger intermediate_size_mlp
    # than the routed experts, run it as a separate dense pass instead of
    # padding every routed expert to the common I_pad.
    I_pad = _round_up(max(I, Is), i_pad_multiple)

    def pad_last(a, target):
        return jnp.pad(a, [(0, 0)] * (a.ndim - 1) + [(0, target - a.shape[-1])])

    gate = pad_last(gate_up_proj[..., :I], I_pad)
    up = pad_last(gate_up_proj[..., I:], I_pad)
    gu = jnp.concatenate([gate, up], axis=-1)                       # (E, H, 2*I_pad)
    dn = jnp.pad(down_proj, ((0, 0), (0, I_pad - I), (0, 0)))       # (E, I_pad, H)
    sgu = jnp.concatenate([pad_last(sg, I_pad), pad_last(su, I_pad)], -1)[None]
    sdn = jnp.pad(sd, ((0, I_pad - Is), (0, 0)))[None]
    gu_all = jnp.concatenate([gu, sgu], axis=0)                     # (E+1, H, 2*I_pad)
    dn_all = jnp.concatenate([dn, sdn], axis=0)                     # (E+1, I_pad, H)
    wr_t = jnp.asarray(router_w).T                                  # (H, E)
    if param_dtype is not None:
        wr_t = wr_t.astype(param_dtype)
        gu_all = gu_all.astype(param_dtype)
        dn_all = dn_all.astype(param_dtype)
    return wr_t, gu_all, dn_all


# --------------------------------------------------------------------------
# Forward.  Per-generation tuning: tm ~256 (v5e/v7x), 512+ (v6e); ti=512.
# --------------------------------------------------------------------------
@functools.partial(jax.jit,
                   static_argnames=("top_k", "tm", "ti", "vmem_limit_bytes"))
def llama4_text_moe(x, wr_t, gu_all, dn_all, *, top_k, tm=256, ti=512,
                    vmem_limit_bytes=None):
    """x: (batch, seq, hidden).
    Returns (out (tokens, hidden), router_scores (num_experts, tokens)),
    matching Llama4TextMoe.forward."""
    B, S, H = x.shape
    T = B * S
    E1, _, twoIp = gu_all.shape           # E1 = num_experts + 1 (last = shared)
    E = E1 - 1
    I_pad = twoIp // 2

    x2d = x.reshape(T, H)
    x_itemsize = jnp.dtype(x.dtype).itemsize
    w_itemsize = jnp.dtype(gu_all.dtype).itemsize
    min_rows = 8 * max(1, 4 // x_itemsize)          # sublane-packing minimum

    # ---------------- tile sizes ----------------
    ti_eff = _pick_divisor_tile(I_pad, ti, base=128)
    n_i = I_pad // ti_eff

    tm_r = max(min_rows, min(_round_up(tm, min_rows), _round_up(T, min_rows)))
    T_pad = _round_up(T, tm_r)

    N = T * top_k + T                               # routed entries + shared pass
    tm_g = max(min_rows, min(_round_up(tm, min_rows), _round_up(N, min_rows)))
    n_tiles_max = (N + tm_g - 1) // tm_g + E1       # static upper bound
    n_rows = n_tiles_max * tm_g

    if vmem_limit_bytes is None:
        vmem_limit_bytes = _auto_vmem_limit(tm_g, tm_r, ti_eff, H, E,
                                            x_itemsize, w_itemsize)

    router_params = pltpu.CompilerParams(
        dimension_semantics=("parallel",),
        vmem_limit_bytes=vmem_limit_bytes)
    moe_params = pltpu.CompilerParams(
        dimension_semantics=("parallel", "arbitrary"),
        vmem_limit_bytes=vmem_limit_bytes)

    # ---------------- router: fused logits + top-k mask + sigmoid ----------
    x_r = x2d if T_pad == T else jnp.pad(x2d, ((0, T_pad - T), (0, 0)))
    scores_full = pl.pallas_call(
        functools.partial(_router_kernel, top_k=top_k, num_experts=E),
        out_shape=jax.ShapeDtypeStruct((T_pad, E), x.dtype),
        grid_spec=pltpu.PrefetchScalarGridSpec(
            num_scalar_prefetch=0,
            grid=(T_pad // tm_r,),
            in_specs=[
                pl.BlockSpec((tm_r, H), lambda t: (t, 0)),
                pl.BlockSpec((H, E), lambda t: (0, 0)),
            ],
            out_specs=pl.BlockSpec((tm_r, E), lambda t: (t, 0)),
        ),
        compiler_params=router_params,
    )(x_r, wr_t)
    scores = scores_full[:T]                        # (T, E) dense, 0 off top-k

    # ---------------- expert grouping (XLA, all static shapes) -------------
    topv, topi = jax.lax.top_k(scores, top_k)       # (T, top_k)
    expert_flat = jnp.concatenate(
        [topi.reshape(-1).astype(jnp.int32), jnp.full((T,), E, jnp.int32)])
    token_flat = jnp.concatenate(
        [jnp.repeat(jnp.arange(T, dtype=jnp.int32), top_k),
         jnp.arange(T, dtype=jnp.int32)])
    scale_flat = jnp.concatenate([topv.reshape(-1), jnp.ones((T,), topv.dtype)])

    order = jnp.argsort(expert_flat)
    expert_sorted = expert_flat[order]
    token_sorted = token_flat[order]
    scale_sorted = scale_flat[order]

    counts = jnp.bincount(expert_flat, length=E1)                       # (E1,)
    group_starts = jnp.concatenate(
        [jnp.zeros((1,), counts.dtype), jnp.cumsum(counts)[:-1]])
    tiles_g = (counts + tm_g - 1) // tm_g
    tile_starts = jnp.concatenate(
        [jnp.zeros((1,), tiles_g.dtype), jnp.cumsum(tiles_g)[:-1]])
    tile_ends = (tile_starts + tiles_g).astype(jnp.int32)
    n_valid = jnp.sum(tiles_g).astype(jnp.int32).reshape(1)

    rank = jnp.arange(N, dtype=jnp.int32) - group_starts[expert_sorted].astype(
        jnp.int32)
    dest = tile_starts[expert_sorted].astype(jnp.int32) * tm_g + rank

    tok_pad = jnp.zeros((n_rows,), jnp.int32).at[dest].set(token_sorted)
    scale_pad = jnp.zeros((n_rows,), scale_flat.dtype).at[dest].set(scale_sorted)

    m_ids = jnp.arange(n_tiles_max, dtype=jnp.int32)
    gid = jnp.sum(m_ids[:, None] >= tile_ends[None, :], axis=-1).astype(jnp.int32)
    gid = jnp.minimum(gid, E)        # invalid trailing tiles reuse shared-expert blocks

    # Gather tokens into expert-grouped order; apply routing scale to the rows
    # (exactly `routed_in = hidden_states * router_scores` in the module).
    x_grp = jnp.take(x2d, tok_pad, axis=0) * scale_pad[:, None].astype(x.dtype)

    # ---------------- grouped SwiGLU over (group tile, intermediate tile) --
    y_grp = pl.pallas_call(
        _grouped_swiglu_kernel,
        out_shape=jax.ShapeDtypeStruct((n_rows, H), x.dtype),
        grid_spec=pltpu.PrefetchScalarGridSpec(
            num_scalar_prefetch=2,
            grid=(n_tiles_max, n_i),
            in_specs=[
                # grouped token tile
                pl.BlockSpec((tm_g, H), lambda m, k, gid, nv: (m, 0)),
                # gate weight tile: first half of the 2*I_pad axis
                pl.BlockSpec((None, H, ti_eff),
                             lambda m, k, gid, nv: (gid[m], 0, k)),
                # up weight tile: second half (same HBM array)
                pl.BlockSpec((None, H, ti_eff),
                             lambda m, k, gid, nv: (gid[m], 0, k + n_i)),
                # down-proj weight tile
                pl.BlockSpec((None, ti_eff, H),
                             lambda m, k, gid, nv: (gid[m], k, 0)),
            ],
            out_specs=pl.BlockSpec((tm_g, H), lambda m, k, gid, nv: (m, 0)),
            scratch_shapes=[pltpu.VMEM((tm_g, H), jnp.float32)],
        ),
        compiler_params=moe_params,
    )(gid, n_valid, x_grp, gu_all, gu_all, dn_all)

    # ---------------- scatter-add back to token order ----------------------
    out = jnp.zeros((T, H), jnp.float32).at[tok_pad].add(
        y_grp.astype(jnp.float32))
    out = out.astype(x.dtype)                       # (tokens, hidden)
    router_scores = scores.T                        # (num_experts, tokens)
    return out, router_scores


# --------------------------------------------------------------------------
# Pure-JAX reference (mirrors the PyTorch module exactly).
# --------------------------------------------------------------------------
def _reference_moe(x, router_w, gate_up_proj, down_proj,
                   shared_gate_w, shared_up_w, shared_down_w, top_k):
    B, S, H = x.shape
    hs = x.reshape(-1, H)
    logits = hs @ router_w.T                                           # (T, E)
    top_val, top_idx = jax.lax.top_k(logits, top_k)
    masked = jnp.full_like(logits, -jnp.inf)
    masked = masked.at[jnp.arange(hs.shape[0])[:, None], top_idx].set(top_val)
    router_scores = jax.nn.sigmoid(masked.astype(jnp.float32)).astype(x.dtype).T
    routed_in = hs[None] * router_scores[:, :, None]                   # (E, T, H)
    gate_up = jnp.einsum("eth,ehf->etf", routed_in, gate_up_proj)
    gate, up = jnp.split(gate_up, 2, axis=-1)
    routed_out = jnp.einsum("etf,efh->eth", up * jax.nn.silu(gate), down_proj)
    shared = (jax.nn.silu(hs @ shared_gate_w.T) * (hs @ shared_up_w.T)) @ shared_down_w.T
    out = shared + routed_out.sum(axis=0)
    return out, router_scores


if __name__ == "__main__":
    batch, seq = 2, 8
    hidden, intermediate = 128, 256
    num_experts, top_k = 4, 2

    key = jax.random.PRNGKey(0)
    kx, kr, kgu, kd, ksg, ksu, ksd = jax.random.split(key, 7)

    x = jax.random.normal(kx, (batch, seq, hidden), dtype=jnp.float32)
    # PyTorch parameter layouts:
    router_w = jax.random.normal(kr, (num_experts, hidden), jnp.float32) * 0.05
    gate_up_proj = jax.random.normal(
        kgu, (num_experts, hidden, 2 * intermediate), jnp.float32) * 0.05
    down_proj = jax.random.normal(
        kd, (num_experts, intermediate, hidden), jnp.float32) * 0.05
    shared_gate_w = jax.random.normal(ksg, (intermediate, hidden), jnp.float32) * 0.05
    shared_up_w = jax.random.normal(ksu, (intermediate, hidden), jnp.float32) * 0.05
    shared_down_w = jax.random.normal(ksd, (hidden, intermediate), jnp.float32) * 0.05

    # One-time, load-time weight prep (outside the jitted forward path).
    wr_t, gu_all, dn_all = prepare_llama4_moe_weights(
        router_w, gate_up_proj, down_proj,
        shared_gate_w, shared_up_w, shared_down_w)

    out, scores = llama4_text_moe(x, wr_t, gu_all, dn_all, top_k=top_k)
    out = jax.block_until_ready(out)
    scores = jax.block_until_ready(scores)

    ref_out, ref_scores = _reference_moe(
        x, router_w, gate_up_proj, down_proj,
        shared_gate_w, shared_up_w, shared_down_w, top_k)

    assert out.shape == (batch * seq, hidden)
    assert scores.shape == (num_experts, batch * seq)
    assert jnp.allclose(scores, ref_scores, atol=2e-3, rtol=2e-3), \
        "router scores mismatch vs reference"
    assert jnp.allclose(out, ref_out, atol=2e-3, rtol=2e-3), \
        "moe output mismatch vs reference"

    print("KERNEL_OK")
</pallas_src>

<mosaic_0001>
module attributes {stable_mosaic.version = 11 : i64} {
  func.func private @main(%arg0: i32) attributes {dimension_semantics = [#tpu.dimension_semantics<core_parallel>], iteration_bounds = array<i64: 2>, tpu.core_type = #tpu.core_type<sc_scalar_subcore>, window_params = []} {
    return
  }
}

module attributes {stable_mosaic.version = 11 : i64} {
  func.func private @main(%arg0: i32) attributes {dimension_semantics = [#tpu.dimension_semantics<core_parallel>], iteration_bounds = array<i64: 2>, tpu.core_type = #tpu.core_type<sc_scalar_subcore>, window_params = []} {
    return
  }
}

module attributes {stable_mosaic.version = 11 : i64} {
  func.func @_router_kernel(%arg0: i32, %arg1: memref<16x128xf32, #tpu.memory_space<vmem>>, %arg2: memref<128x4xf32, #tpu.memory_space<vmem>>, %arg3: memref<16x4xf32, #tpu.memory_space<vmem>>) attributes {dimension_semantics = [#tpu.dimension_semantics<parallel>], iteration_bounds = array<i64: 1>, scalar_prefetch = 0 : i64, scratch_operands = 0 : i64, tpu.core_type = #tpu.core_type<tc>, window_params = [{transform_indices = @transform_0, window_bounds = array<i64: 16, 128>}, {pipeline_mode = #tpu.pipeline_mode<synchronous>, transform_indices = @transform_1, window_bounds = array<i64: 128, 4>}, {transform_indices = @transform_2, window_bounds = array<i64: 16, 4>}]} {
    %c0 = arith.constant 0 : index
    %c0_0 = arith.constant 0 : index
    %0 = vector.load %arg1[%c0, %c0_0] : memref<16x128xf32, #tpu.memory_space<vmem>>, vector<16x128xf32>
    %c0_1 = arith.constant 0 : index
    %c0_2 = arith.constant 0 : index
    %1 = vector.load %arg2[%c0_1, %c0_2] : memref<128x4xf32, #tpu.memory_space<vmem>>, vector<128x4xf32>
    %cst = arith.constant dense<0.000000e+00> : vector<16x4xf32>
    %2 = tpu.matmul %0, %1, %cst {dimension_numbers = #tpu.dot_dimension_numbers<[1], [0], [0], [1], [0, 0, 1, 1], [], []>} : vector<16x128xf32>, vector<128x4xf32>, vector<16x4xf32> -> vector<16x4xf32>
    %3 = tpu.iota {dimensions = array<i32: 1>} : vector<16x4xi32>
    %false = arith.constant false
    %4 = vector.broadcast %false : i1 to vector<16x4xi1>
    %cst_3 = arith.constant dense<0xFF800000> : vector<16xf32>
    %5 = vector.multi_reduction <maximumf>, %2, %cst_3 [1] : vector<16x4xf32> to vector<16xf32>
    %6 = vector.shape_cast %5 : vector<16xf32> to vector<16x1xf32>
    %7 = vector.broadcast %6 : vector<16x1xf32> to vector<16x4xf32>
    %8 = arith.cmpf oeq, %2, %7 : vector<16x4xf32>
    %c4_i32 = arith.constant 4 : i32
    %9 = vector.broadcast %c4_i32 : i32 to vector<16x4xi32>
    %10 = arith.select %8, %3, %9 : vector<16x4xi1>, vector<16x4xi32>
    %cst_4 = arith.constant dense<2147483647> : vector<16xi32>
    %11 = vector.multi_reduction <minsi>, %10, %cst_4 [1] : vector<16x4xi32> to vector<16xi32>
    %12 = vector.shape_cast %11 : vector<16xi32> to vector<16x1xi32>
    %13 = vector.broadcast %12 : vector<16x1xi32> to vector<16x4xi32>
    %14 = arith.cmpi eq, %3, %13 : vector<16x4xi32>
    %15 = arith.ori %4, %14 : vector<16x4xi1>
    %cst_5 = arith.constant 0xFF800000 : f32
    %16 = vector.broadcast %cst_5 : f32 to vector<16x4xf32>
    %17 = arith.select %14, %16, %2 : vector<16x4xi1>, vector<16x4xf32>
    %cst_6 = arith.constant dense<0xFF800000> : vector<16xf32>
    %18 = vector.multi_reduction <maximumf>, %17, %cst_6 [1] : vector<16x4xf32> to vector<16xf32>
    %19 = vector.shape_cast %18 : vector<16xf32> to vector<16x1xf32>
    %20 = vector.broadcast %19 : vector<16x1xf32> to vector<16x4xf32>
    %21 = arith.cmpf oeq, %17, %20 : vector<16x4xf32>
    %c4_i32_7 = arith.constant 4 : i32
    %22 = vector.broadcast %c4_i32_7 : i32 to vector<16x4xi32>
    %23 = arith.select %21, %3, %22 : vector<16x4xi1>, vector<16x4xi32>
    %cst_8 = arith.constant dense<2147483647> : vector<16xi32>
    %24 = vector.multi_reduction <minsi>, %23, %cst_8 [1] : vector<16x4xi32> to vector<16xi32>
    %25 = vector.shape_cast %24 : vector<16xi32> to vector<16x1xi32>
    %26 = vector.broadcast %25 : vector<16x1xi32> to vector<16x4xi32>
    %27 = arith.cmpi eq, %3, %26 : vector<16x4xi32>
    %28 = arith.ori %15, %27 : vector<16x4xi1>
    %29 = arith.negf %2 : vector<16x4xf32>
    %30 = math.exp %29 : vector<16x4xf32>
    %cst_9 = arith.constant 1.000000e+00 : f32
    %31 = vector.broadcast %cst_9 : f32 to vector<16x4xf32>
    %32 = arith.addf %31, %30 : vector<16x4xf32>
    %33 = arith.divf %31, %32 : vector<16x4xf32>
    %cst_10 = arith.constant 0.000000e+00 : f32
    %34 = vector.broadcast %cst_10 : f32 to vector<16x4xf32>
    %35 = arith.select %28, %33, %34 : vector<16x4xi1>, vector<16x4xf32>
    %c0_11 = arith.constant 0 : index
    %c0_12 = arith.constant 0 : index
    %36 = vector.load %arg3[%c0_11, %c0_12] : memref<16x4xf32, #tpu.memory_space<vmem>>, vector<16x4xf32>
    tpu.vector_store %arg3[%c0_11, %c0_12], %35 {strides = array<i32>} : memref<16x4xf32, #tpu.memory_space<vmem>>, vector<16x4xf32>,
    return
  }
  func.func @transform_0(%arg0: i32) -> (i32, i32) {
    %c0_i32 = arith.constant 0 : i32
    %c0_i32_0 = arith.constant 0 : i32
    return %arg0, %c0_i32 : i32, i32
  }
  func.func @transform_1(%arg0: i32) -> (i32, i32) {
    %c0_i32 = arith.constant 0 : i32
    %c0_i32_0 = arith.constant 0 : i32
    %c0_i32_1 = arith.constant 0 : i32
    return %c0_i32, %c0_i32_0 : i32, i32
  }
  func.func @transform_2(%arg0: i32) -> (i32, i32) {
    %c0_i32 = arith.constant 0 : i32
    %c0_i32_0 = arith.constant 0 : i32
    return %arg0, %c0_i32 : i32, i32
  }
}

module attributes {stable_mosaic.version = 11 : i64} {
  func.func @_grouped_swiglu_kernel(%arg0: i32, %arg1: i32, %arg2: memref<6xi32, #tpu.memory_space<smem>>, %arg3: memref<1xi32, #tpu.memory_space<smem>>, %arg4: memref<48x128xf32, #tpu.memory_space<vmem>>, %arg5: memref<1x128x512xf32, #tpu.memory_space<vmem>>, %arg6: memref<1x128x512xf32, #tpu.memory_space<vmem>>, %arg7: memref<1x512x128xf32, #tpu.memory_space<vmem>>, %arg8: memref<48x128xf32, #tpu.memory_space<vmem>>, %arg9: memref<48x128xf32, #tpu.memory_space<vmem>>) attributes {dimension_semantics = [#tpu.dimension_semantics<parallel>, #tpu.dimension_semantics<arbitrary>], iteration_bounds = array<i64: 6, 1>, scalar_prefetch = 2 : i64, scratch_operands = 1 : i64, tpu.core_type = #tpu.core_type<tc>, window_params = [{transform_indices = @transform_0, window_bounds = array<i64: 48, 128>}, {transform_indices = @transform_1, window_bounds = array<i64: 1, 128, 512>}, {transform_indices = @transform_2, window_bounds = array<i64: 1, 128, 512>}, {transform_indices = @transform_3, window_bounds = array<i64: 1, 512, 128>}, {transform_indices = @transform_4, window_bounds = array<i64: 48, 128>}]} {
    %c0_i32 = arith.constant 0 : i32
    %0 = arith.cmpi eq, %arg1, %c0_i32 : i32
    %1 = arith.extui %0 : i1 to i32
    %c0_i32_0 = arith.constant 0 : i32
    %2 = arith.cmpi ne, %1, %c0_i32_0 : i32
    scf.if %2 {
      %cst = arith.constant 0.000000e+00 : f32
      %10 = vector.broadcast %cst : f32 to vector<48x128xf32>
      %c0_4 = arith.constant 0 : index
      %c0_5 = arith.constant 0 : index
      %11 = vector.load %arg9[%c0_4, %c0_5] : memref<48x128xf32, #tpu.memory_space<vmem>>, vector<48x128xf32>
      tpu.vector_store %arg9[%c0_4, %c0_5], %10 {strides = array<i32>} : memref<48x128xf32, #tpu.memory_space<vmem>>, vector<48x128xf32>,
    } else {
    }
    %c0 = arith.constant 0 : index
    %3 = memref.load %arg3[%c0] : memref<1xi32, #tpu.memory_space<smem>>
    %4 = arith.cmpi slt, %arg0, %3 : i32
    %5 = arith.extui %4 : i1 to i32
    %c0_i32_1 = arith.constant 0 : i32
    %6 = arith.cmpi ne, %5, %c0_i32_1 : i32
    scf.if %6 {
      %c0_4 = arith.constant 0 : index
      %c0_5 = arith.constant 0 : index
      %10 = vector.load %arg4[%c0_4, %c0_5] : memref<48x128xf32, #tpu.memory_space<vmem>>, vector<48x128xf32>
      %c0_6 = arith.constant 0 : index
      %c0_7 = arith.constant 0 : index
      %c0_8 = arith.constant 0 : index
      %11 = vector.load %arg5[%c0_6, %c0_7, %c0_8] : memref<1x128x512xf32, #tpu.memory_space<vmem>>, vector<1x128x512xf32>
      %12 = vector.shape_cast %11 : vector<1x128x512xf32> to vector<128x512xf32>
      %cst = arith.constant dense<0.000000e+00> : vector<48x512xf32>
      %13 = tpu.matmul %10, %12, %cst {dimension_numbers = #tpu.dot_dimension_numbers<[1], [0], [0], [1], [0, 0, 1, 1], [], []>} : vector<48x128xf32>, vector<128x512xf32>, vector<48x512xf32> -> vector<48x512xf32>
      %c0_9 = arith.constant 0 : index
      %c0_10 = arith.constant 0 : index
      %c0_11 = arith.constant 0 : index
      %14 = vector.load %arg6[%c0_9, %c0_10, %c0_11] : memref<1x128x512xf32, #tpu.memory_space<vmem>>, vector<1x128x512xf32>
      %15 = vector.shape_cast %14 : vector<1x128x512xf32> to vector<128x512xf32>
      %cst_12 = arith.constant dense<0.000000e+00> : vector<48x512xf32>
      %16 = tpu.matmul %10, %15, %cst_12 {dimension_numbers = #tpu.dot_dimension_numbers<[1], [0], [0], [1], [0, 0, 1, 1], [], []>} : vector<48x128xf32>, vector<128x512xf32>, vector<48x512xf32> -> vector<48x512xf32>
      %17 = arith.negf %13 : vector<48x512xf32>
      %18 = math.exp %17 : vector<48x512xf32>
      %cst_13 = arith.constant 1.000000e+00 : f32
      %19 = vector.broadcast %cst_13 : f32 to vector<48x512xf32>
      %20 = arith.addf %19, %18 : vector<48x512xf32>
      %21 = arith.divf %19, %20 : vector<48x512xf32>
      %22 = arith.mulf %13, %21 : vector<48x512xf32>
      %23 = arith.mulf %22, %16 : vector<48x512xf32>
      %c0_14 = arith.constant 0 : index
      %c0_15 = arith.constant 0 : index
      %24 = vector.load %arg9[%c0_14, %c0_15] : memref<48x128xf32, #tpu.memory_space<vmem>>, vector<48x128xf32>
      %c0_16 = arith.constant 0 : index
      %c0_17 = arith.constant 0 : index
      %c0_18 = arith.constant 0 : index
      %25 = vector.load %arg7[%c0_16, %c0_17, %c0_18] : memref<1x512x128xf32, #tpu.memory_space<vmem>>, vector<1x512x128xf32>
      %26 = vector.shape_cast %25 : vector<1x512x128xf32> to vector<512x128xf32>
      %cst_19 = arith.constant dense<0.000000e+00> : vector<48x128xf32>
      %27 = tpu.matmul %23, %26, %cst_19 {dimension_numbers = #tpu.dot_dimension_numbers<[1], [0], [0], [1], [0, 0, 1, 1], [], []>} : vector<48x512xf32>, vector<512x128xf32>, vector<48x128xf32> -> vector<48x128xf32>
      %28 = arith.addf %24, %27 : vector<48x128xf32>
      %c0_20 = arith.constant 0 : index
      %c0_21 = arith.constant 0 : index
      %29 = vector.load %arg9[%c0_20, %c0_21] : memref<48x128xf32, #tpu.memory_space<vmem>>, vector<48x128xf32>
      tpu.vector_store %arg9[%c0_20, %c0_21], %28 {strides = array<i32>} : memref<48x128xf32, #tpu.memory_space<vmem>>, vector<48x128xf32>,
    } else {
    }
    %c0_i32_2 = arith.constant 0 : i32
    %7 = arith.cmpi eq, %arg1, %c0_i32_2 : i32
    %8 = arith.extui %7 : i1 to i32
    %c0_i32_3 = arith.constant 0 : i32
    %9 = arith.cmpi ne, %8, %c0_i32_3 : i32
    scf.if %9 {
      %c0_4 = arith.constant 0 : index
      %c0_5 = arith.constant 0 : index
      %10 = vector.load %arg9[%c0_4, %c0_5] : memref<48x128xf32, #tpu.memory_space<vmem>>, vector<48x128xf32>
      %c0_6 = arith.constant 0 : index
      %c0_7 = arith.constant 0 : index
      %11 = vector.load %arg8[%c0_6, %c0_7] : memref<48x128xf32, #tpu.memory_space<vmem>>, vector<48x128xf32>
      tpu.vector_store %arg8[%c0_6, %c0_7], %10 {strides = array<i32>} : memref<48x128xf32, #tpu.memory_space<vmem>>, vector<48x128xf32>,
    } else {
    }
    return
  }
  func.func @transform_0(%arg0: i32, %arg1: i32, %arg2: memref<6xi32, #tpu.memory_space<smem>>, %arg3: memref<1xi32, #tpu.memory_space<smem>>) -> (i32, i32) {
    %c0_i32 = arith.constant 0 : i32
    %c0_i32_0 = arith.constant 0 : i32
    return %arg0, %c0_i32 : i32, i32
  }
  func.func @transform_1(%arg0: i32, %arg1: i32, %arg2: memref<6xi32, #tpu.memory_space<smem>>, %arg3: memref<1xi32, #tpu.memory_space<smem>>) -> (i32, i32, i32) {
    %0 = arith.index_cast %arg0 : i32 to index
    %1 = memref.load %arg2[%0] : memref<6xi32, #tpu.memory_space<smem>>
    %c0_i32 = arith.constant 0 : i32
    %c0_i32_0 = arith.constant 0 : i32
    return %1, %c0_i32, %arg1 : i32, i32, i32
  }
  func.func @transform_2(%arg0: i32, %arg1: i32, %arg2: memref<6xi32, #tpu.memory_space<smem>>, %arg3: memref<1xi32, #tpu.memory_space<smem>>) -> (i32, i32, i32) {
    %0 = arith.index_cast %arg0 : i32 to index
    %1 = memref.load %arg2[%0] : memref<6xi32, #tpu.memory_space<smem>>
    %c1_i32 = arith.constant 1 : i32
    %2 = arith.addi %arg1, %c1_i32 : i32
    %c0_i32 = arith.constant 0 : i32
    %c0_i32_0 = arith.constant 0 : i32
    return %1, %c0_i32, %2 : i32, i32, i32
  }
  func.func @transform_3(%arg0: i32, %arg1: i32, %arg2: memref<6xi32, #tpu.memory_space<smem>>, %arg3: memref<1xi32, #tpu.memory_space<smem>>) -> (i32, i32, i32) {
    %0 = arith.index_cast %arg0 : i32 to index
    %1 = memref.load %arg2[%0] : memref<6xi32, #tpu.memory_space<smem>>
    %c0_i32 = arith.constant 0 : i32
    %c0_i32_0 = arith.constant 0 : i32
    return %1, %arg1, %c0_i32 : i32, i32, i32
  }
  func.func @transform_4(%arg0: i32, %arg1: i32, %arg2: memref<6xi32, #tpu.memory_space<smem>>, %arg3: memref<1xi32, #tpu.memory_space<smem>>) -> (i32, i32) {
    %c0_i32 = arith.constant 0 : i32
    %c0_i32_0 = arith.constant 0 : i32
    return %arg0, %c0_i32 : i32, i32
  }
}

</mosaic_0001>

<bundles_post_ra>
// kernel: llama4_text_moe.2
= control target key start
LH: loop header
LB: loop body
LE: loop exit
PB: predicated region body
PF: predicated region fallthrough
CT: control target
= control target key end

     0   :  { %7 = vsyncpa [#allocation3], 0  ;;  %s352_s9 = smov [#allocation2]   ;;  %s476_s0 = inlined_call_operand.hbm [shape: f32[16,128], index: 0, kind: input, shape index: {}]   ;;  %s477_s1 = inlined_call_operand.vmem [shape: f32[128,4], index: 1, kind: input, shape index: {}]   ;;  %s478_s2 = inlined_call_operand.vmem [shape: f32[16,4], index: 2, kind: output, shape index: {}]  }
   0x1   :  { %s13_s10 = sshll.u32 %s352_s9, 4  ;;  %s328_s13 = scalar_lea.hbm %s476_s0, 256  ;;  %s14_s10 = int_to_ptr.vmem [resolvable:$true] %s13_s10 }
   0x2   :  { %p329_p0 = scmp.ne.s32.totalorder %s476_s0, %s328_s13  ;;  %p332_p1 = scmp.lt.u32.totalorder %s328_s13, %s476_s0 }
   0x4   :  { %p334_p2 = pnand %p332_p1, %p329_p0 }
   0x6   :  { %337 = shalt.err (!%p334_p2)
}
   0x7   :  { %s338_s18 = scalar_lea.vmem %s14_s10, 256  ;;  %p343_p4 = scmp.lt.s32.totalorder %s14_s10, %s14_s10 }
   0x8   :  { %p339_p3 = scmp.ne.s32.totalorder %s14_s10, %s338_s18  ;;  %p344_p5 = scmp.lt.s32.totalorder %s338_s18, %s338_s18 }
   0xa   :  { %p345_p6 = por %p344_p5, %p343_p4 }
   0xc   :  { %p346_p7 = pnand %p345_p6, %p339_p3 }
   0xe   :  { %349 = shalt.err (!%p346_p7)
}
   0xf   :  { %s353_s19 = smov 128   ;;  %s354_s20 = smov 8  }
  0x10   :  { %19 = dma.hbm_to_vmem [thread:$0]  %s476_s0, 256, %s14_s10, [#allocation3], %s353_s19, %s353_s19, %s354_s20  }
  0x11   :  { %350 = dma.done.wait [#allocation3], 256  }
  0x12   :  { %351 = vsyncadd [#allocation3], 4294967040  ;;  %v27_v0 = vld [vmem:[%s477_s1] sm:$0xff]  ;;  %v28_v1 = vld [vmem:[%s477_s1 + $0x8] sm:$0xff]  ;;  %vm120_vm0 = vcmask 31744   ;;  %v118_v30 = vlaneseq }
  0x13   :  { %v29_v2 = vld [vmem:[%s477_s1 + $0x10] sm:$0xff]  ;;  %v285_v3 = vpack.c.bf16 %v28_v1, %v27_v0  ;;  %v30_v4 = vld [vmem:[%s477_s1 + $0x18] sm:$0xff]  ;;  %v31_v6 = vld [vmem:[%s477_s1 + $0x20] sm:$0xff] }
  0x14   :  { %v289_v5 = vpack.c.bf16 %v30_v4, %v29_v2  ;;  %v32_v7 = vld [vmem:[%s477_s1 + $0x28] sm:$0xff]  ;;  %v25_v9 = vld [vmem:[#allocation2] sm:$0xff]  ;;  %v33_v10 = vld [vmem:[%s477_s1 + $0x30] sm:$0xff]  ;;  %v438_v31 = vand.u32 127, %v118_v30 }
  0x15   :  { %286 = vmatprep.subr.bf16.mxu0 %v285_v3  ;;  %v293_v8 = vpack.c.bf16 %v32_v7, %v31_v6  ;;  %v34_v11 = vld [vmem:[%s477_s1 + $0x38] sm:$0xff]  ;;  %282 = vmatprep.mubr.f32.mxu0 %v25_v9  ;;  %v35_v13 = vld [vmem:[%s477_s1 + $0x40] sm:$0xff]  ;;  %v36_v14 = vld [vmem:[%s477_s1 + $0x48] sm:$0xff] }
  0x16   :  { %288 = vmatpush3.bf16.msra.mxu0 %v285_v3  ;;  %v297_v12 = vpack.c.bf16 %v34_v11, %v33_v10  ;;  %v301_v15 = vpack.c.bf16 %v36_v14, %v35_v13  ;;  %v37_v16 = vld [vmem:[%s477_s1 + $0x50] sm:$0xff]  ;;  %v38_v17 = vld [vmem:[%s477_s1 + $0x58] sm:$0xff]  ;;  %v39_v19 = vld [vmem:[%s477_s1 + $0x60] sm:$0xff] }
  0x17   :  { %290 = vmatprep.subr.bf16.mxu0 %v289_v5  ;;  %v305_v18 = vpack.c.bf16 %v38_v17, %v37_v16  ;;  %v40_v20 = vld [vmem:[%s477_s1 + $0x68] sm:$0xff]  ;;  %v41_v22 = vld [vmem:[%s477_s1 + $0x70] sm:$0xff]  ;;  %v42_v23 = vld [vmem:[%s477_s1 + $0x78] sm:$0xff] }
  0x18   :  { %v309_v21 = vpack.c.bf16 %v40_v20, %v39_v19  ;;  %v313_v24 = vpack.c.bf16 %v42_v23, %v41_v22  ;;  %v26_v25 = vld [vmem:[#allocation2 + $0x8] sm:$0xff] }
  0x1a   :  { %292 = vmatpush3.bf16.msra.mxu0 %v289_v5 }
  0x1b   :  { %294 = vmatprep.subr.bf16.mxu0 %v293_v8 }
  0x1e   :  { %296 = vmatpush3.bf16.msra.mxu0 %v293_v8 }
  0x1f   :  { %298 = vmatprep.subr.bf16.mxu0 %v297_v12 }
  0x22   :  { %300 = vmatpush3.bf16.msra.mxu0 %v297_v12 }
  0x23   :  { %302 = vmatprep.subr.bf16.mxu0 %v301_v15 }
  0x26   :  { %304 = vmatpush3.bf16.msra.mxu0 %v301_v15 }
  0x27   :  { %306 = vmatprep.subr.bf16.mxu0 %v305_v18 }
  0x2a   :  { %308 = vmatpush3.bf16.msra.mxu0 %v305_v18 }
  0x2b   :  { %310 = vmatprep.subr.bf16.mxu0 %v309_v21 }
  0x2e   :  { %312 = vmatpush3.bf16.msra.mxu0 %v309_v21 }
  0x2f   :  { %314 = vmatprep.subr.bf16.mxu0 %v313_v24 }
  0x32   :  { %316 = vmatpush3.bf16.msra.mxu0 %v313_v24 }
  0x35   :  { %283 = vmatmul.mubr.f32.vlgmr.msra.gmra.mrb[0].mxu0 %v26_v25 }
 0x108   :  { %v430_v26 = vpop.f32.mrb[0].mxu0 }
 0x109   :  { %v432_v27 = vpop.f32.mrb[1].mxu0  ;;  %v124_v29 = vsel %vm120_vm0, %v430_v26, -inf  ;;  %v231_v19 = vmul.f32 -1.442695, %v430_v26 }
 0x10a   :  { %v121_v28 = vsel %vm120_vm0, %v432_v27, -inf  ;;  %v230_v18 = vmul.f32 -1.442695, %v432_v27 }
 0x10b   :  { %122 = vmax.xlane.f32.xlu0 %v121_v28 }
 0x10c   :  { %320 = vpow2.f32 %v230_v18 }
 0x10d   :  { %322 = vpow2.f32 %v231_v19 }
 0x10f   :  { %125 = vmax.xlane.f32.xlu0 %v124_v29 }
 0x116   :  { %v321_v20 = vpop.eup %320 }
 0x117   :  { %v215_v21 = vadd.f32 1.0, %v321_v20  ;;  %v323_v22 = vpop.eup %322 }
 0x118   :  { %v216_v23 = vadd.f32 1.0, %v323_v22 }
 0x119   :  { %324 = vrcp.f32 %v215_v21 }
 0x11a   :  { %326 = vrcp.f32 %v216_v23 }
 0x198   :  { %v123_v32 = vpop.xlane.xlu0 %122 }
 0x199   :  { %vm127_vm1 = vcmp.eq.f32.partialorder %v432_v27, %v123_v32 }
 0x19a   :  { %v129_v33 = vsel %vm127_vm1, %v438_v31, 4 }
 0x19b   :  { %v131_v34 = vsel %vm120_vm0, %v129_v33, 2147483647 }
 0x19c   :  { %v126_v35 = vpop.xlane.xlu0 %125  ;;  %v133_v36 = vshra.s32 %v131_v34, 16  ;;  %v132_v42 = vand.u32 65535, %v131_v34 }
 0x19d   :  { %vm128_vm2 = vcmp.eq.f32.partialorder %v430_v26, %v126_v35 }
 0x19e   :  { %v130_v37 = vsel %vm128_vm2, %v438_v31, 4  ;;  %v135_v38 = vcvt.s32.f32 %v133_v36  ;;  %v134_v44 = vcvt.s32.f32 %v132_v42 }
 0x19f   :  { %v146_v39 = vsel %vm120_vm0, %v130_v37, 2147483647 }
 0x1a0   :  { %136 = vmin.xlane.f32.xlu1 %v135_v38  ;;  %v148_v40 = vshra.s32 %v146_v39, 16  ;;  %v147_v45 = vand.u32 65535, %v146_v39 }
 0x1a2   :  { %v150_v41 = vcvt.s32.f32 %v148_v40  ;;  %v149_v48 = vcvt.s32.f32 %v147_v45 }
 0x1a4   :  { %151 = vmin.xlane.f32.xlu1 %v150_v41 }
 0x22d   :  { %v137_v43 = vpop.xlane.xlu1 %136 }
 0x22e   :  { %vm138_vm3 = vcmp.eq.f32.partialorder %v135_v38, %v137_v43  ;;  %v143_v50 = vcvt.f32.s32 %v137_v43 }
 0x22f   :  { %v139_v46 = vsel %vm138_vm3, %v134_v44, inf }
 0x230   :  { %140 = vmin.xlane.f32.xlu0 %v139_v46  ;;  %v144_v52 = vshll.u32 %v143_v50, 16 }
 0x231   :  { %v152_v47 = vpop.xlane.xlu1 %151 }
 0x232   :  { %vm153_vm4 = vcmp.eq.f32.partialorder %v150_v41, %v152_v47  ;;  %v158_v53 = vcvt.f32.s32 %v152_v47 }
 0x233   :  { %v154_v49 = vsel %vm153_vm4, %v149_v48, inf }
 0x234   :  { %155 = vmin.xlane.f32.xlu1 %v154_v49  ;;  %v159_v57 = vshll.u32 %v158_v53, 16 }
 0x2bd   :  { %v141_v51 = vpop.xlane.xlu0 %140 }
 0x2be   :  { %v142_v54 = vcvt.f32.s32 %v141_v51 }
 0x2c0   :  { %v145_v55 = vadd.s32 %v144_v52, %v142_v54 }
 0x2c1   :  { %v156_v56 = vpop.xlane.xlu1 %155 }
 0x2c2   :  { %v157_v58 = vcvt.f32.s32 %v156_v56  ;;  %vm161_vm5 = vcmp.eq.s32.totalorder %v438_v31, %v145_v55 }
 0x2c3   :  { %v163_v59 = vsel %vm161_vm5, -inf, %v432_v27 }
 0x2c4   :  { %v160_v60 = vadd.s32 %v159_v57, %v157_v58  ;;  %v165_v61 = vsel %vm120_vm0, %v163_v59, -inf }
 0x2c5   :  { %166 = vmax.xlane.f32.xlu0 %v165_v61 }
 0x2c6   :  { %vm162_vm6 = vcmp.eq.s32.totalorder %v438_v31, %v160_v60 }
 0x2c7   :  { %v164_v62 = vsel %vm162_vm6, -inf, %v430_v26  ;;  %v325_v26 = vpop.eup %324 }
 0x2c8   :  { %v168_v63 = vsel %vm120_vm0, %v164_v62, -inf  ;;  %v327_v37 = vpop.eup %326 }
 0x2c9   :  { %169 = vmax.xlane.f32.xlu1 %v168_v63 }
 0x352   :  { %v167_v0 = vpop.xlane.xlu0 %166 }
 0x353   :  { %vm171_vm7 = vcmp.eq.f32.partialorder %v163_v59, %v167_v0 }
 0x354   :  { %v173_v1 = vsel %vm171_vm7, %v438_v31, 4 }
 0x355   :  { %v175_v2 = vsel %vm120_vm0, %v173_v1, 2147483647 }
 0x356   :  { %v170_v3 = vpop.xlane.xlu1 %169  ;;  %v177_v4 = vshra.s32 %v175_v2, 16  ;;  %v176_v10 = vand.u32 65535, %v175_v2 }
 0x357   :  { %vm172_vm8 = vcmp.eq.f32.partialorder %v164_v62, %v170_v3 }
 0x358   :  { %v174_v5 = vsel %vm172_vm8, %v438_v31, 4  ;;  %v179_v6 = vcvt.s32.f32 %v177_v4  ;;  %v178_v12 = vcvt.s32.f32 %v176_v10 }
 0x359   :  { %v190_v7 = vsel %vm120_vm0, %v174_v5, 2147483647 }
 0x35a   :  { %180 = vmin.xlane.f32.xlu0 %v179_v6  ;;  %v192_v8 = vshra.s32 %v190_v7, 16  ;;  %v191_v13 = vand.u32 65535, %v190_v7 }
 0x35c   :  { %v194_v9 = vcvt.s32.f32 %v192_v8  ;;  %v193_v16 = vcvt.s32.f32 %v191_v13 }
 0x35e   :  { %195 = vmin.xlane.f32.xlu1 %v194_v9 }
 0x3e7   :  { %v181_v11 = vpop.xlane.xlu0 %180 }
 0x3e8   :  { %vm182_vm9 = vcmp.eq.f32.partialorder %v179_v6, %v181_v11  ;;  %v187_v24 = vcvt.f32.s32 %v181_v11 }
 0x3e9   :  { %v183_v14 = vsel %vm182_vm9, %v178_v12, inf }
 0x3ea   :  { %184 = vmin.xlane.f32.xlu0 %v183_v14  ;;  %v188_v28 = vshll.u32 %v187_v24, 16 }
 0x3eb   :  { %v196_v15 = vpop.xlane.xlu1 %195 }
 0x3ec   :  { %vm197_vm10 = vcmp.eq.f32.partialorder %v194_v9, %v196_v15  ;;  %v202_v29 = vcvt.f32.s32 %v196_v15 }
 0x3ed   :  { %v198_v17 = vsel %vm197_vm10, %v193_v16, inf }
 0x3ee   :  { %199 = vmin.xlane.f32.xlu1 %v198_v17  ;;  %v203_v34 = vshll.u32 %v202_v29, 16 }
 0x477   :  { %v185_v25 = vpop.xlane.xlu0 %184 }
 0x478   :  { %v186_v30 = vcvt.f32.s32 %v185_v25 }
 0x47a   :  { %v189_v32 = vadd.s32 %v188_v28, %v186_v30 }
 0x47b   :  { %v200_v33 = vpop.xlane.xlu1 %199 }
 0x47c   :  { %vm205_vm11 = vcmp.eq.s32.totalorder %v438_v31, %v189_v32  ;;  %v201_v27 = vcvt.f32.s32 %v200_v33 }
 0x47d   :  { %vm207_vm12 = vmor %vm161_vm5, %vm205_vm11 }
 0x47e   :  { %v221_v35 = vsel %vm207_vm12, %v325_v26, 0.0  ;;  %v204_v36 = vadd.s32 %v203_v34, %v201_v27 }
 0x47f   :  { %223 = vst.msk [vmem:[%s478_s2] sm:$0xff] %vm120_vm0, %v221_v35 }
 0x480   :  { %vm206_vm13 = vcmp.eq.s32.totalorder %v438_v31, %v204_v36 }
 0x481   :  { %vm208_vm14 = vmor %vm162_vm6, %vm206_vm13 }
 0x482   :  { %v222_v38 = vsel %vm208_vm14, %v327_v37, 0.0 }
 0x483   :  { %224 = vst.msk [vmem:[%s478_s2 + $0x8] sm:$0xff] %vm120_vm0, %v222_v38 }
 0x484   :  { %229 = vsyncpa [#allocation3], 1 }

// kernel: llama4_text_moe.3
= control target key start
LH: loop header
LB: loop body
LE: loop exit
PB: predicated region body
PF: predicated region fallthrough
CT: control target
= control target key end

     0   :  { %s3192_s0 = inlined_call_operand.vmem [shape: s32[6], index: 0, kind: input, shape index: {}]   ;;  %s3193_s1 = inlined_call_operand.<no memory space> [shape: s32[1], index: 1, kind: input, shape index: {}]   ;;  %s3194_s2 = inlined_call_operand.vmem [shape: f32[288,128], index: 2, kind: input, shape index: {}]   ;;  %s3195_s3 = inlined_call_operand.vmem [shape: f32[5,128,1024], index: 3, kind: input, shape index: {}, may-alias: {3,4}]   ;;  %s3196_s4 = inlined_call_operand.vmem [shape: f32[5,128,1024], index: 4, kind: input, shape index: {}, may-alias: {3,4}]   ;;  %s3197_s5 = inlined_call_operand.vmem [shape: f32[5,512,128], index: 5, kind: input, shape index: {}]   ;;  %s3198_s6 = inlined_call_operand.vmem [shape: f32[288,128], index: 6, kind: output, shape index: {}]  }
   0x1   :  { %s11_s23 = sshll.u32 %s3192_s0, 4  ;;  %15 = sst [smem:[#allocation5]] %s3193_s1  ;;  %s12_s23 = int_to_ptr.vmem [resolvable:$true] %s11_s23 }
   0x2   :  { %s2335_s26 = scalar_lea.vmem %s12_s23, 16  ;;  %p2340_p1 = scmp.lt.s32.totalorder %s12_s23, %s12_s23 }
   0x3   :  { %p2336_p0 = scmp.ne.s32.totalorder %s12_s23, %s2335_s26  ;;  %p2341_p2 = scmp.lt.s32.totalorder %s2335_s26, %s2335_s26 }
   0x5   :  { %p2342_p3 = por %p2341_p2, %p2340_p1 }
   0x7   :  { %p2343_p4 = pnand %p2342_p3, %p2336_p0 }
   0x9   :  { %2346 = shalt.err (!%p2343_p4)  }
   0xa   :  { %s2405_s27 = smov [#allocation4]  }
   0xb   :  { %14 = dma.vmem_to_smem %s12_s23, 16, %s2405_s27, [#allocation3] }
   0xc   :  { %2375 = dma.done.wait [#allocation3], 16 }
   0xd   :  { %2376 = vsyncadd [#allocation3], 4294967280 }
   0xe   :  { %17 = sfence }
   0xf   :  { %s2449_s28 = smov 0   ;;  %s2451_s0 = smov 0  }
  0x10   :  { %s2453_s29 = smov 0   ;;  %s2455_s1 = smov 0  }
  0x11   :  { %s2457_s30 = smov 0   ;;  %s2459_s7 = smov 0  }
  0x12   :  { %s2461_s8 = smov 0  }
  0x13 LB: > { %s35_s9 = sadd.s32 1, %s2399_s7  ;;  %s65_s10 = sld [smem:[#allocation4 + %s2399_s7]]  ;;  %s2403_s8 = sphi %s2461_s8, %s23_s8   ;;  %s2399_s7 = sphi %s2459_s7, %s3206_s7   ;;  %s2395_s30 = sphi %s2457_s30, %s3205_s30   ;;  %s2391_s1 = sphi %s2455_s1, %s3204_s1   ;;  %s2387_s29 = sphi %s2453_s29, %s3203_s29   ;;  %s2383_s0 = sphi %s2451_s0, %s3202_s0   ;;  %s2379_s28 = sphi %s2449_s28, %s3201_s28  }
  0x14   : > { %p37_p5 = scmp.ge.s32.totalorder %s35_s9, 6  ;;  %p79_p6 = scmp.ne.s32.totalorder %s2391_s1, %s2387_s29 }
  0x15   : > { %p80_p7 = scmp.eq.s32.totalorder %s2403_s8, 0  ;;  %s95_s12 = sld [smem:[#allocation4 + %s2399_s7]] }
  0x16   : > { %s3208_s9 = smov (%p37_p5, %s35_s9), 0  ;;  %p111_p9 = scmp.ne.s32.totalorder %s2383_s0, %s2379_s28 }
  0x17   : > { %p2491_p8 = por %p80_p7, %p79_p6  ;;  %s66_s13 = sld [smem:[#allocation4 + %s3208_s9]] }
  0x18   : > { %s97_s14 = sld [smem:[#allocation4 + %s3208_s9]]  ;;  %p2500_p10 = por %p111_p9, %p80_p7 }
  0x19   : > { %s72_s16 = sadd.s32 1, %s2391_s1  ;;  %s104_s17 = sadd.s32 1, %s2383_s0 }
  0x1a   : > { %p1780_p13 = scmp.ge.s32.totalorder %s2403_s8, 6 }
  0x1c   : > { %193 = sbr.rel (%p1780_p13) target bundleno = 119 (0x77), region = 16 }
  0x1d   : > { %s67_s18 = ssub.s32 %s65_s10, %s66_s13 }
  0x1e   : > { %s99_s19 = ssub.s32 %s95_s12, %s97_s14  ;;  %p70_p11 = scmp.eq.s32.totalorder %s67_s18, 0 }
  0x1f   : > { %p102_p12 = scmp.eq.s32.totalorder %s99_s19, 0 }
  0x20   : > { %s2507_s20 = scalar_select %p70_p11, %s2391_s1, %s72_s16  }
  0x21   : > { %s2510_s21 = scalar_select %p102_p12, %s2383_s0, %s104_s17  }
  0x23   : > { %205 = sbr.rel (!%p2491_p8) target bundleno = 77 (0x4d), region = 24  ;;  %s207_s22 = sand.u32 (%p2491_p8), 1, %s2391_s1  }
  0x24   : > { %s210_s23 = sld [smem:[#allocation4 + %s2399_s7]] (%p2491_p8)  ;;  %s1781_s24 = sshll.u32 (%p2491_p8), %s207_s22, 9 }
  0x25   : > { %s2525_s11 = scalar_lea.vmem (%p2491_p8), [#allocation6], %s1781_s24 }
  0x2a   : > { %s1885_s25 = sshll.u32 %s210_s23, 10 }
  0x2b   : > { %s2520_s10 = scalar_lea.vmem %s3195_s3, %s1885_s25 }
  0x2c   : > { %v228_v0 = vld [vmem:[%s2520_s10] sm:$0xff]  ;;  %v230_v1 = vld [vmem:[%s2520_s10 + $0x8] sm:$0xff]  ;;  %v232_v2 = vld [vmem:[%s2520_s10 + $0x10] sm:$0xff] }
  0x2d   : > { %229 = vst [vmem:[%s2525_s11] sm:$0xff] %v228_v0  ;;  %231 = vst [vmem:[%s2525_s11 + $0x8] sm:$0xff] %v230_v1  ;;  %v234_v3 = vld [vmem:[%s2520_s10 + $0x18] sm:$0xff]  ;;  %v236_v4 = vld [vmem:[%s2520_s10 + $0x40] sm:$0xff] }
  0x2e   : > { %233 = vst [vmem:[%s2525_s11 + $0x10] sm:$0xff] %v232_v2  ;;  %v238_v5 = vld [vmem:[%s2520_s10 + $0x48] sm:$0xff]  ;;  %235 = vst [vmem:[%s2525_s11 + $0x18] sm:$0xff] %v234_v3  ;;  %v240_v6 = vld [vmem:[%s2520_s10 + $0x50] sm:$0xff] }
  0x2f   : > { %237 = vst [vmem:[%s2525_s11 + $0x20] sm:$0xff] %v236_v4  ;;  %239 = vst [vmem:[%s2525_s11 + $0x28] sm:$0xff] %v238_v5  ;;  %v242_v7 = vld [vmem:[%s2520_s10 + $0x58] sm:$0xff]  ;;  %v244_v8 = vld [vmem:[%s2520_s10 + $0x80] sm:$0xff] }
  0x30   : > { %241 = vst [vmem:[%s2525_s11 + $0x30] sm:$0xff] %v240_v6  ;;  %243 = vst [vmem:[%s2525_s11 + $0x38] sm:$0xff] %v242_v7  ;;  %v246_v9 = vld [vmem:[%s2520_s10 + $0x88] sm:$0xff]  ;;  %v248_v10 = vld [vmem:[%s2520_s10 + $0x90] sm:$0xff] }
  0x31   : > { %245 = vst [vmem:[%s2525_s11 + $0x40] sm:$0xff] %v244_v8  ;;  %v250_v11 = vld [vmem:[%s2520_s10 + $0x98] sm:$0xff]  ;;  %247 = vst [vmem:[%s2525_s11 + $0x48] sm:$0xff] %v246_v9  ;;  %v252_v12 = vld [vmem:[%s2520_s10 + $0xc0] sm:$0xff] }
  0x32   : > { %249 = vst [vmem:[%s2525_s11 + $0x50] sm:$0xff] %v248_v10  ;;  %251 = vst [vmem:[%s2525_s11 + $0x58] sm:$0xff] %v250_v11  ;;  %v254_v13 = vld [vmem:[%s2520_s10 + $0xc8] sm:$0xff]  ;;  %v256_v14 = vld [vmem:[%s2520_s10 + $0xd0] sm:$0xff] }
  0x33   : > { %253 = vst [vmem:[%s2525_s11 + $0x60] sm:$0xff] %v252_v12  ;;  %255 = vst [vmem:[%s2525_s11 + $0x68] sm:$0xff] %v254_v13  ;;  %v258_v15 = vld [vmem:[%s2520_s10 + $0xd8] sm:$0xff]  ;;  %v260_v16 = vld [vmem:[%s2520_s10 + $0x100] sm:$0xff] }
  0x34   : > { %257 = vst [vmem:[%s2525_s11 + $0x70] sm:$0xff] %v256_v14  ;;  %v262_v17 = vld [vmem:[%s2520_s10 + $0x108] sm:$0xff]  ;;  %259 = vst [vmem:[%s2525_s11 + $0x78] sm:$0xff] %v258_v15  ;;  %v264_v18 = vld [vmem:[%s2520_s10 + $0x110] sm:$0xff] }
  0x35   : > { %261 = vst [vmem:[%s2525_s11 + $0x80] sm:$0xff] %v260_v16  ;;  %263 = vst [vmem:[%s2525_s11 + $0x88] sm:$0xff] %v262_v17  ;;  %v266_v19 = vld [vmem:[%s2520_s10 + $0x118] sm:$0xff]  ;;  %v268_v20 = vld [vmem:[%s2520_s10 + $0x140] sm:$0xff] }
  0x36   : > { %265 = vst [vmem:[%s2525_s11 + $0x90] sm:$0xff] %v264_v18  ;;  %267 = vst [vmem:[%s2525_s11 + $0x98] sm:$0xff] %v266_v19  ;;  %v270_v21 = vld [vmem:[%s2520_s10 + $0x148] sm:$0xff]  ;;  %v272_v22 = vld [vmem:[%s2520_s10 + $0x150] sm:$0xff] }
  0x37   : > { %269 = vst [vmem:[%s2525_s11 + $0xa0] sm:$0xff] %v268_v20  ;;  %v274_v23 = vld [vmem:[%s2520_s10 + $0x158] sm:$0xff]  ;;  %271 = vst [vmem:[%s2525_s11 + $0xa8] sm:$0xff] %v270_v21  ;;  %v276_v24 = vld [vmem:[%s2520_s10 + $0x180] sm:$0xff] }
  0x38   : > { %273 = vst [vmem:[%s2525_s11 + $0xb0] sm:$0xff] %v272_v22  ;;  %275 = vst [vmem:[%s2525_s11 + $0xb8] sm:$0xff] %v274_v23  ;;  %v278_v25 = vld [vmem:[%s2520_s10 + $0x188] sm:$0xff]  ;;  %v280_v26 = vld [vmem:[%s2520_s10 + $0x190] sm:$0xff] }
  0x39   : > { %277 = vst [vmem:[%s2525_s11 + $0xc0] sm:$0xff] %v276_v24  ;;  %279 = vst [vmem:[%s2525_s11 + $0xc8] sm:$0xff] %v278_v25  ;;  %v282_v27 = vld [vmem:[%s2520_s10 + $0x198] sm:$0xff]  ;;  %v284_v28 = vld [vmem:[%s2520_s10 + $0x1c0] sm:$0xff] }
  0x3a   : > { %281 = vst [vmem:[%s2525_s11 + $0xd0] sm:$0xff] %v280_v26  ;;  %v286_v29 = vld [vmem:[%s2520_s10 + $0x1c8] sm:$0xff]  ;;  %283 = vst [vmem:[%s2525_s11 + $0xd8] sm:$0xff] %v282_v27  ;;  %v288_v30 = vld [vmem:[%s2520_s10 + $0x1d0] sm:$0xff] }
  0x3b   : > { %285 = vst [vmem:[%s2525_s11 + $0xe0] sm:$0xff] %v284_v28  ;;  %287 = vst [vmem:[%s2525_s11 + $0xe8] sm:$0xff] %v286_v29  ;;  %v290_v31 = vld [vmem:[%s2520_s10 + $0x1d8] sm:$0xff]  ;;  %v292_v32 = vld [vmem:[%s2520_s10 + $0x200] sm:$0xff] }
  0x3c   : > { %289 = vst [vmem:[%s2525_s11 + $0xf0] sm:$0xff] %v288_v30  ;;  %291 = vst [vmem:[%s2525_s11 + $0xf8] sm:$0xff] %v290_v31  ;;  %v294_v33 = vld [vmem:[%s2520_s10 + $0x208] sm:$0xff]  ;;  %v296_v34 = vld [vmem:[%s2520_s10 + $0x210] sm:$0xff] }
  0x3d   : > { %293 = vst [vmem:[%s2525_s11 + $0x100] sm:$0xff] %v292_v32  ;;  %v298_v35 = vld [vmem:[%s2520_s10 + $0x218] sm:$0xff]  ;;  %295 = vst [vmem:[%s2525_s11 + $0x108] sm:$0xff] %v294_v33  ;;  %v300_v36 = vld [vmem:[%s2520_s10 + $0x240] sm:$0xff] }
  0x3e   : > { %297 = vst [vmem:[%s2525_s11 + $0x110] sm:$0xff] %v296_v34  ;;  %299 = vst [vmem:[%s2525_s11 + $0x118] sm:$0xff] %v298_v35  ;;  %v302_v37 = vld [vmem:[%s2520_s10 + $0x248] sm:$0xff]  ;;  %v304_v38 = vld [vmem:[%s2520_s10 + $0x250] sm:$0xff] }
  0x3f   : > { %301 = vst [vmem:[%s2525_s11 + $0x120] sm:$0xff] %v300_v36  ;;  %303 = vst [vmem:[%s2525_s11 + $0x128] sm:$0xff] %v302_v37  ;;  %v306_v39 = vld [vmem:[%s2520_s10 + $0x258] sm:$0xff]  ;;  %v308_v40 = vld [vmem:[%s2520_s10 + $0x280] sm:$0xff] }
  0x40   : > { %305 = vst [vmem:[%s2525_s11 + $0x130] sm:$0xff] %v304_v38  ;;  %v310_v41 = vld [vmem:[%s2520_s10 + $0x288] sm:$0xff]  ;;  %307 = vst [vmem:[%s2525_s11 + $0x138] sm:$0xff] %v306_v39  ;;  %v312_v42 = vld [vmem:[%s2520_s10 + $0x290] sm:$0xff] }
  0x41   : > { %309 = vst [vmem:[%s2525_s11 + $0x140] sm:$0xff] %v308_v40  ;;  %311 = vst [vmem:[%s2525_s11 + $0x148] sm:$0xff] %v310_v41  ;;  %v314_v43 = vld [vmem:[%s2520_s10 + $0x298] sm:$0xff]  ;;  %v316_v44 = vld [vmem:[%s2520_s10 + $0x2c0] sm:$0xff] }
  0x42   : > { %313 = vst [vmem:[%s2525_s11 + $0x150] sm:$0xff] %v312_v42  ;;  %315 = vst [vmem:[%s2525_s11 + $0x158] sm:$0xff] %v314_v43  ;;  %v318_v45 = vld [vmem:[%s2520_s10 + $0x2c8] sm:$0xff]  ;;  %v320_v46 = vld [vmem:[%s2520_s10 + $0x2d0] sm:$0xff] }
  0x43   : > { %317 = vst [vmem:[%s2525_s11 + $0x160] sm:$0xff] %v316_v44  ;;  %v322_v47 = vld [vmem:[%s2520_s10 + $0x2d8] sm:$0xff]  ;;  %319 = vst [vmem:[%s2525_s11 + $0x168] sm:$0xff] %v318_v45  ;;  %v324_v48 = vld [vmem:[%s2520_s10 + $0x300] sm:$0xff] }
  0x44   : > { %321 = vst [vmem:[%s2525_s11 + $0x170] sm:$0xff] %v320_v46  ;;  %323 = vst [vmem:[%s2525_s11 + $0x178] sm:$0xff] %v322_v47  ;;  %v326_v49 = vld [vmem:[%s2520_s10 + $0x308] sm:$0xff]  ;;  %v328_v50 = vld [vmem:[%s2520_s10 + $0x310] sm:$0xff] }
  0x45   : > { %325 = vst [vmem:[%s2525_s11 + $0x180] sm:$0xff] %v324_v48  ;;  %327 = vst [vmem:[%s2525_s11 + $0x188] sm:$0xff] %v326_v49  ;;  %v330_v51 = vld [vmem:[%s2520_s10 + $0x318] sm:$0xff]  ;;  %v332_v52 = vld [vmem:[%s2520_s10 + $0x340] sm:$0xff] }
  0x46   : > { %329 = vst [vmem:[%s2525_s11 + $0x190] sm:$0xff] %v328_v50  ;;  %v334_v53 = vld [vmem:[%s2520_s10 + $0x348] sm:$0xff]  ;;  %331 = vst [vmem:[%s2525_s11 + $0x198] sm:$0xff] %v330_v51  ;;  %v336_v54 = vld [vmem:[%s2520_s10 + $0x350] sm:$0xff] }
  0x47   : > { %333 = vst [vmem:[%s2525_s11 + $0x1a0] sm:$0xff] %v332_v52  ;;  %335 = vst [vmem:[%s2525_s11 + $0x1a8] sm:$0xff] %v334_v53  ;;  %v338_v55 = vld [vmem:[%s2520_s10 + $0x358] sm:$0xff]  ;;  %v340_v56 = vld [vmem:[%s2520_s10 + $0x380] sm:$0xff] }
  0x48   : > { %337 = vst [vmem:[%s2525_s11 + $0x1b0] sm:$0xff] %v336_v54  ;;  %339 = vst [vmem:[%s2525_s11 + $0x1b8] sm:$0xff] %v338_v55  ;;  %v342_v57 = vld [vmem:[%s2520_s10 + $0x388] sm:$0xff]  ;;  %v344_v58 = vld [vmem:[%s2520_s10 + $0x390] sm:$0xff] }
  0x49   : > { %341 = vst [vmem:[%s2525_s11 + $0x1c0] sm:$0xff] %v340_v56  ;;  %v346_v59 = vld [vmem:[%s2520_s10 + $0x398] sm:$0xff]  ;;  %343 = vst [vmem:[%s2525_s11 + $0x1c8] sm:$0xff] %v342_v57  ;;  %v348_v60 = vld [vmem:[%s2520_s10 + $0x3c0] sm:$0xff] }
  0x4a   : > { %345 = vst [vmem:[%s2525_s11 + $0x1d0] sm:$0xff] %v344_v58  ;;  %347 = vst [vmem:[%s2525_s11 + $0x1d8] sm:$0xff] %v346_v59  ;;  %v350_v61 = vld [vmem:[%s2520_s10 + $0x3c8] sm:$0xff]  ;;  %v352_v62 = vld [vmem:[%s2520_s10 + $0x3d0] sm:$0xff] }
  0x4b   : > { %349 = vst [vmem:[%s2525_s11 + $0x1e0] sm:$0xff] %v348_v60  ;;  %351 = vst [vmem:[%s2525_s11 + $0x1e8] sm:$0xff] %v350_v61  ;;  %v354_v63 = vld [vmem:[%s2520_s10 + $0x3d8] sm:$0xff] }
  0x4c   : > { %353 = vst [vmem:[%s2525_s11 + $0x1f0] sm:$0xff] %v352_v62  ;;  %355 = vst [vmem:[%s2525_s11 + $0x1f8] sm:$0xff] %v354_v63 }
  0x4d PF: > { %361 = sbr.rel (!%p2500_p10) target bundleno = 119 (0x77), region = 47  ;;  %s363_s12 = sand.u32 (%p2500_p10), 1, %s2383_s0  }
  0x4e   : > { %s366_s13 = sld [smem:[#allocation4 + %s2399_s7]] (%p2500_p10)  ;;  %s1784_s14 = sshll.u32 (%p2500_p10), %s363_s12, 9 }
  0x4f   : > { %s2664_s15 = scalar_lea.vmem (%p2500_p10), [#allocation7], %s1784_s14 }
  0x54   : > { %s1886_s16 = sshll.u32 %s366_s13, 10 }
  0x55   : > { %s2659_s19 = scalar_lea.vmem %s3196_s4, %s1886_s16 }
  0x56   : > { %v1787_v0 = vld [vmem:[%s2659_s19 + $0x20] sm:$0xff]  ;;  %v1788_v1 = vld [vmem:[%s2659_s19 + $0x28] sm:$0xff]  ;;  %v1789_v2 = vld [vmem:[%s2659_s19 + $0x30] sm:$0xff] }
  0x57   : > { %386 = vst [vmem:[%s2664_s15] sm:$0xff] %v1787_v0  ;;  %388 = vst [vmem:[%s2664_s15 + $0x8] sm:$0xff] %v1788_v1  ;;  %v1790_v3 = vld [vmem:[%s2659_s19 + $0x38] sm:$0xff]  ;;  %v1791_v4 = vld [vmem:[%s2659_s19 + $0x60] sm:$0xff] }
  0x58   : > { %390 = vst [vmem:[%s2664_s15 + $0x10] sm:$0xff] %v1789_v2  ;;  %v1792_v5 = vld [vmem:[%s2659_s19 + $0x68] sm:$0xff]  ;;  %392 = vst [vmem:[%s2664_s15 + $0x18] sm:$0xff] %v1790_v3  ;;  %v1793_v6 = vld [vmem:[%s2659_s19 + $0x70] sm:$0xff] }
  0x59   : > { %394 = vst [vmem:[%s2664_s15 + $0x20] sm:$0xff] %v1791_v4  ;;  %396 = vst [vmem:[%s2664_s15 + $0x28] sm:$0xff] %v1792_v5  ;;  %v1794_v7 = vld [vmem:[%s2659_s19 + $0x78] sm:$0xff]  ;;  %v1795_v8 = vld [vmem:[%s2659_s19 + $0xa0] sm:$0xff] }
  0x5a   : > { %398 = vst [vmem:[%s2664_s15 + $0x30] sm:$0xff] %v1793_v6  ;;  %400 = vst [vmem:[%s2664_s15 + $0x38] sm:$0xff] %v1794_v7  ;;  %v1796_v9 = vld [vmem:[%s2659_s19 + $0xa8] sm:$0xff]  ;;  %v1797_v10 = vld [vmem:[%s2659_s19 + $0xb0] sm:$0xff] }
  0x5b   : > { %402 = vst [vmem:[%s2664_s15 + $0x40] sm:$0xff] %v1795_v8  ;;  %v1798_v11 = vld [vmem:[%s2659_s19 + $0xb8] sm:$0xff]  ;;  %404 = vst [vmem:[%s2664_s15 + $0x48] sm:$0xff] %v1796_v9  ;;  %v1799_v12 = vld [vmem:[%s2659_s19 + $0xe0] sm:$0xff] }
  0x5c   : > { %406 = vst [vmem:[%s2664_s15 + $0x50] sm:$0xff] %v1797_v10  ;;  %408 = vst [vmem:[%s2664_s15 + $0x58] sm:$0xff] %v1798_v11  ;;  %v1800_v13 = vld [vmem:[%s2659_s19 + $0xe8] sm:$0xff]  ;;  %v1801_v14 = vld [vmem:[%s2659_s19 + $0xf0] sm:$0xff] }
  0x5d   : > { %410 = vst [vmem:[%s2664_s15 + $0x60] sm:$0xff] %v1799_v12  ;;  %412 = vst [vmem:[%s2664_s15 + $0x68] sm:$0xff] %v1800_v13  ;;  %v1802_v15 = vld [vmem:[%s2659_s19 + $0xf8] sm:$0xff]  ;;  %v1803_v16 = vld [vmem:[%s2659_s19 + $0x120] sm:$0xff] }
  0x5e   : > { %414 = vst [vmem:[%s2664_s15 + $0x70] sm:$0xff] %v1801_v14  ;;  %v1804_v17 = vld [vmem:[%s2659_s19 + $0x128] sm:$0xff]  ;;  %416 = vst [vmem:[%s2664_s15 + $0x78] sm:$0xff] %v1802_v15  ;;  %v1805_v18 = vld [vmem:[%s2659_s19 + $0x130] sm:$0xff] }
  0x5f   : > { %418 = vst [vmem:[%s2664_s15 + $0x80] sm:$0xff] %v1803_v16  ;;  %420 = vst [vmem:[%s2664_s15 + $0x88] sm:$0xff] %v1804_v17  ;;  %v1806_v19 = vld [vmem:[%s2659_s19 + $0x138] sm:$0xff]  ;;  %v1807_v20 = vld [vmem:[%s2659_s19 + $0x160] sm:$0xff] }
  0x60   : > { %422 = vst [vmem:[%s2664_s15 + $0x90] sm:$0xff] %v1805_v18  ;;  %424 = vst [vmem:[%s2664_s15 + $0x98] sm:$0xff] %v1806_v19  ;;  %v1808_v21 = vld [vmem:[%s2659_s19 + $0x168] sm:$0xff]  ;;  %v1809_v22 = vld [vmem:[%s2659_s19 + $0x170] sm:$0xff] }
  0x61   : > { %426 = vst [vmem:[%s2664_s15 + $0xa0] sm:$0xff] %v1807_v20  ;;  %v1810_v23 = vld [vmem:[%s2659_s19 + $0x178] sm:$0xff]  ;;  %428 = vst [vmem:[%s2664_s15 + $0xa8] sm:$0xff] %v1808_v21  ;;  %v1811_v24 = vld [vmem:[%s2659_s19 + $0x1a0] sm:$0xff] }
  0x62   : > { %430 = vst [vmem:[%s2664_s15 + $0xb0] sm:$0xff] %v1809_v22  ;;  %432 = vst [vmem:[%s2664_s15 + $0xb8] sm:$0xff] %v1810_v23  ;;  %v1812_v25 = vld [vmem:[%s2659_s19 + $0x1a8] sm:$0xff]  ;;  %v1813_v26 = vld [vmem:[%s2659_s19 + $0x1b0] sm:$0xff] }
  0x63   : > { %434 = vst [vmem:[%s2664_s15 + $0xc0] sm:$0xff] %v1811_v24  ;;  %436 = vst [vmem:[%s2664_s15 + $0xc8] sm:$0xff] %v1812_v25  ;;  %v1814_v27 = vld [vmem:[%s2659_s19 + $0x1b8] sm:$0xff]  ;;  %v1815_v28 = vld [vmem:[%s2659_s19 + $0x1e0] sm:$0xff] }
  0x64   : > { %438 = vst [vmem:[%s2664_s15 + $0xd0] sm:$0xff] %v1813_v26  ;;  %v1816_v29 = vld [vmem:[%s2659_s19 + $0x1e8] sm:$0xff]  ;;  %440 = vst [vmem:[%s2664_s15 + $0xd8] sm:$0xff] %v1814_v27  ;;  %v1817_v30 = vld [vmem:[%s2659_s19 + $0x1f0] sm:$0xff] }
  0x65   : > { %442 = vst [vmem:[%s2664_s15 + $0xe0] sm:$0xff] %v1815_v28  ;;  %444 = vst [vmem:[%s2664_s15 + $0xe8] sm:$0xff] %v1816_v29  ;;  %v1818_v31 = vld [vmem:[%s2659_s19 + $0x1f8] sm:$0xff]  ;;  %v1819_v32 = vld [vmem:[%s2659_s19 + $0x220] sm:$0xff] }
  0x66   : > { %446 = vst [vmem:[%s2664_s15 + $0xf0] sm:$0xff] %v1817_v30  ;;  %448 = vst [vmem:[%s2664_s15 + $0xf8] sm:$0xff] %v1818_v31  ;;  %v1820_v33 = vld [vmem:[%s2659_s19 + $0x228] sm:$0xff]  ;;  %v1821_v34 = vld [vmem:[%s2659_s19 + $0x230] sm:$0xff] }
  0x67   : > { %450 = vst [vmem:[%s2664_s15 + $0x100] sm:$0xff] %v1819_v32  ;;  %v1822_v35 = vld [vmem:[%s2659_s19 + $0x238] sm:$0xff]  ;;  %452 = vst [vmem:[%s2664_s15 + $0x108] sm:$0xff] %v1820_v33  ;;  %v1823_v36 = vld [vmem:[%s2659_s19 + $0x260] sm:$0xff] }
  0x68   : > { %454 = vst [vmem:[%s2664_s15 + $0x110] sm:$0xff] %v1821_v34  ;;  %456 = vst [vmem:[%s2664_s15 + $0x118] sm:$0xff] %v1822_v35  ;;  %v1824_v37 = vld [vmem:[%s2659_s19 + $0x268] sm:$0xff]  ;;  %v1825_v38 = vld [vmem:[%s2659_s19 + $0x270] sm:$0xff] }
  0x69   : > { %458 = vst [vmem:[%s2664_s15 + $0x120] sm:$0xff] %v1823_v36  ;;  %460 = vst [vmem:[%s2664_s15 + $0x128] sm:$0xff] %v1824_v37  ;;  %v1826_v39 = vld [vmem:[%s2659_s19 + $0x278] sm:$0xff]  ;;  %v1827_v40 = vld [vmem:[%s2659_s19 + $0x2a0] sm:$0xff] }
  0x6a   : > { %462 = vst [vmem:[%s2664_s15 + $0x130] sm:$0xff] %v1825_v38  ;;  %v1828_v41 = vld [vmem:[%s2659_s19 + $0x2a8] sm:$0xff]  ;;  %464 = vst [vmem:[%s2664_s15 + $0x138] sm:$0xff] %v1826_v39  ;;  %v1829_v42 = vld [vmem:[%s2659_s19 + $0x2b0] sm:$0xff] }
  0x6b   : > { %466 = vst [vmem:[%s2664_s15 + $0x140] sm:$0xff] %v1827_v40  ;;  %468 = vst [vmem:[%s2664_s15 + $0x148] sm:$0xff] %v1828_v41  ;;  %v1830_v43 = vld [vmem:[%s2659_s19 + $0x2b8] sm:$0xff]  ;;  %v1831_v44 = vld [vmem:[%s2659_s19 + $0x2e0] sm:$0xff] }
  0x6c   : > { %470 = vst [vmem:[%s2664_s15 + $0x150] sm:$0xff] %v1829_v42  ;;  %472 = vst [vmem:[%s2664_s15 + $0x158] sm:$0xff] %v1830_v43  ;;  %v1832_v45 = vld [vmem:[%s2659_s19 + $0x2e8] sm:$0xff]  ;;  %v1833_v46 = vld [vmem:[%s2659_s19 + $0x2f0] sm:$0xff] }
  0x6d   : > { %474 = vst [vmem:[%s2664_s15 + $0x160] sm:$0xff] %v1831_v44  ;;  %v1834_v47 = vld [vmem:[%s2659_s19 + $0x2f8] sm:$0xff]  ;;  %476 = vst [vmem:[%s2664_s15 + $0x168] sm:$0xff] %v1832_v45  ;;  %v1835_v48 = vld [vmem:[%s2659_s19 + $0x320] sm:$0xff] }
  0x6e   : > { %478 = vst [vmem:[%s2664_s15 + $0x170] sm:$0xff] %v1833_v46  ;;  %480 = vst [vmem:[%s2664_s15 + $0x178] sm:$0xff] %v1834_v47  ;;  %v1836_v49 = vld [vmem:[%s2659_s19 + $0x328] sm:$0xff]  ;;  %v1837_v50 = vld [vmem:[%s2659_s19 + $0x330] sm:$0xff] }
  0x6f   : > { %482 = vst [vmem:[%s2664_s15 + $0x180] sm:$0xff] %v1835_v48  ;;  %484 = vst [vmem:[%s2664_s15 + $0x188] sm:$0xff] %v1836_v49  ;;  %v1838_v51 = vld [vmem:[%s2659_s19 + $0x338] sm:$0xff]  ;;  %v1839_v52 = vld [vmem:[%s2659_s19 + $0x360] sm:$0xff] }
  0x70   : > { %486 = vst [vmem:[%s2664_s15 + $0x190] sm:$0xff] %v1837_v50  ;;  %v1840_v53 = vld [vmem:[%s2659_s19 + $0x368] sm:$0xff]  ;;  %488 = vst [vmem:[%s2664_s15 + $0x198] sm:$0xff] %v1838_v51  ;;  %v1841_v54 = vld [vmem:[%s2659_s19 + $0x370] sm:$0xff] }
  0x71   : > { %490 = vst [vmem:[%s2664_s15 + $0x1a0] sm:$0xff] %v1839_v52  ;;  %492 = vst [vmem:[%s2664_s15 + $0x1a8] sm:$0xff] %v1840_v53  ;;  %v1842_v55 = vld [vmem:[%s2659_s19 + $0x378] sm:$0xff]  ;;  %v1843_v56 = vld [vmem:[%s2659_s19 + $0x3a0] sm:$0xff] }
  0x72   : > { %494 = vst [vmem:[%s2664_s15 + $0x1b0] sm:$0xff] %v1841_v54  ;;  %496 = vst [vmem:[%s2664_s15 + $0x1b8] sm:$0xff] %v1842_v55  ;;  %v1844_v57 = vld [vmem:[%s2659_s19 + $0x3a8] sm:$0xff]  ;;  %v1845_v58 = vld [vmem:[%s2659_s19 + $0x3b0] sm:$0xff] }
  0x73   : > { %498 = vst [vmem:[%s2664_s15 + $0x1c0] sm:$0xff] %v1843_v56  ;;  %v1846_v59 = vld [vmem:[%s2659_s19 + $0x3b8] sm:$0xff]  ;;  %500 = vst [vmem:[%s2664_s15 + $0x1c8] sm:$0xff] %v1844_v57  ;;  %v1847_v60 = vld [vmem:[%s2659_s19 + $0x3e0] sm:$0xff] }
  0x74   : > { %502 = vst [vmem:[%s2664_s15 + $0x1d0] sm:$0xff] %v1845_v58  ;;  %504 = vst [vmem:[%s2664_s15 + $0x1d8] sm:$0xff] %v1846_v59  ;;  %v1848_v61 = vld [vmem:[%s2659_s19 + $0x3e8] sm:$0xff]  ;;  %v1849_v62 = vld [vmem:[%s2659_s19 + $0x3f0] sm:$0xff] }
  0x75   : > { %506 = vst [vmem:[%s2664_s15 + $0x1e0] sm:$0xff] %v1847_v60  ;;  %508 = vst [vmem:[%s2664_s15 + $0x1e8] sm:$0xff] %v1848_v61  ;;  %v1850_v63 = vld [vmem:[%s2659_s19 + $0x3f8] sm:$0xff] }
  0x76   : > { %510 = vst [vmem:[%s2664_s15 + $0x1f0] sm:$0xff] %v1849_v62  ;;  %512 = vst [vmem:[%s2664_s15 + $0x1f8] sm:$0xff] %v1850_v63 }
  0x77 PF: > { %p1851_p0 = scmp.ge.s32.totalorder %s2403_s8, 1  ;;  %p532_p1 = scmp.lt.s32.totalorder %s2403_s8, 7 }
  0x79   : > { %p533_p2 = pnand %p1851_p0, %p532_p1 }
  0x7a   : > { %s539_s22 = sand.u32 (!%p533_p2), 1, %s2387_s29   ;;  %s546_s23 = sand.u32 (!%p533_p2), 1, %s2379_s28   ;;  %v2406_v0 = vmov (!%p533_p2), 0.0  }
  0x7b   : > { %536 = sbr.rel (%p533_p2) target bundleno = 677 (0x2a5), region = 74  ;;  %s1852_s24 = sshll.u32 (!%p533_p2), %s539_s22, 9  ;;  %623 = vst [vmem:[#allocation2] sm:$0xff] (!%p533_p2), %v2406_v0  ;;  %624 = vst [vmem:[#allocation2 + $0x8] sm:$0xff] (!%p533_p2), %v2406_v0 }
  0x7c   : > { %s1853_s25 = sshll.u32 (!%p533_p2), %s546_s23, 9  ;;  %625 = vst [vmem:[#allocation2 + $0x10] sm:$0xff] (!%p533_p2), %v2406_v0  ;;  %626 = vst [vmem:[#allocation2 + $0x18] sm:$0xff] (!%p533_p2), %v2406_v0  ;;  %s590_s26 = smul.u32 (!%p533_p2), 6, %s2395_s30 }
  0x7d   : > { %627 = vst [vmem:[#allocation2 + $0x20] sm:$0xff] (!%p533_p2), %v2406_v0  ;;  %628 = vst [vmem:[#allocation2 + $0x28] sm:$0xff] (!%p533_p2), %v2406_v0  ;;  %s601_s27 = sld [smem:[#allocation4 + %s2395_s30]] (!%p533_p2)  ;;  %s2812_s22 = scalar_lea.vmem (!%p533_p2), [#allocation6], %s1852_s24 }
  0x7e   : > { %s629_s10 = sld [smem:[#allocation5]] (!%p533_p2)  ;;  %p591_p3 = scmp.lt.s32.totalorder (!%p533_p2), %s590_s26, 35 }
  0x7f   : > { %s2814_s23 = scalar_lea.vmem (!%p533_p2), [#allocation7], %s1853_s25 }
  0x82   : > { %s3210_s26 = smov (!%p591_p3, %s590_s26), 35 }
  0x83   : > { %s1854_s11 = sshll.u32 %s3210_s26, 3  ;;  %p603_p4 = scmp.lt.s32.totalorder %s601_s27, 4 }
  0x84   : > { %s2800_s28 = scalar_lea.vmem %s3194_s2, %s1854_s11  ;;  %s2805_s16 = scalar_lea.vmem %s3198_s6, %s1854_s11 }
  0x85   : > { %s3212_s27 = smov (!%p603_p4, %s601_s27), 4  ;;  %p1858_p5 = scmp.ge.s32.totalorder %s2395_s30, %s629_s10 }
  0x86   : > { %s1887_s17 = sshll.u32 %s3212_s27, 9  ;;  %v641_v1 = vld [vmem:[%s2812_s22 + $0x8] sm:$0xff] (!%p1858_p5)  ;;  %v643_v3 = vld [vmem:[%s2812_s22 + $0x18] sm:$0xff] (!%p1858_p5)  ;;  %v640_v6 = vld [vmem:[%s2812_s22] sm:$0xff] (!%p1858_p5)  ;;  %v2407_v8 = vmov (!%p1858_p5), 0.0  }
  0x87   : > { %s2810_s15 = scalar_lea.vmem %s3197_s5, %s1887_s17  ;;  %633 = sbr.rel (%p1858_p5) target bundleno = 669 (0x29d), region = 90  ;;  %v645_v2 = vld [vmem:[%s2812_s22 + $0x28] sm:$0xff] (!%p1858_p5)  ;;  %v647_v5 = vld [vmem:[%s2812_s22 + $0x38] sm:$0xff] (!%p1858_p5)  ;;  %v644_v7 = vld [vmem:[%s2812_s22 + $0x20] sm:$0xff] (!%p1858_p5)  ;;  %768 = vmatprep.mubr.f32.mxu0 (!%p1858_p5), %v2407_v8  ;;  %869 = vmatprep.mubr.f32.mxu1 (!%p1858_p5), %v2407_v8 }
  0x88   : > { %v1988_v4 = vpack.c.bf16 (!%p1858_p5), %v645_v2, %v641_v1  ;;  %v2020_v9 = vpack.c.bf16 (!%p1858_p5), %v647_v5, %v643_v3  ;;  %v1990_v10 = vpack.c.bf16 (!%p1858_p5), %v644_v7, %v640_v6  ;;  %v642_v11 = vld [vmem:[%s2812_s22 + $0x10] sm:$0xff] (!%p1858_p5)  ;;  %v649_v13 = vld [vmem:[%s2812_s22 + $0x48] sm:$0xff] (!%p1858_p5)  ;;  %v651_v16 = vld [vmem:[%s2812_s22 + $0x58] sm:$0xff] (!%p1858_p5) }
  0x89   : > { %v646_v12 = vld [vmem:[%s2812_s22 + $0x30] sm:$0xff] (!%p1858_p5)  ;;  %v653_v15 = vld [vmem:[%s2812_s22 + $0x68] sm:$0xff] (!%p1858_p5)  ;;  %v655_v17 = vld [vmem:[%s2812_s22 + $0x78] sm:$0xff] (!%p1858_p5) }
  0x8a   : > { %1989 = vmatprep.subr.bf16.mxu0 (!%p1858_p5), %v1988_v4  ;;  %v2022_v14 = vpack.c.bf16 (!%p1858_p5), %v646_v12, %v642_v11  ;;  %2021 = vmatprep.subr.bf16.mxu1 (!%p1858_p5), %v2020_v9  ;;  %v1992_v18 = vpack.c.bf16 (!%p1858_p5), %v653_v15, %v649_v13  ;;  %v2024_v19 = vpack.c.bf16 (!%p1858_p5), %v655_v17, %v651_v16  ;;  %v648_v20 = vld [vmem:[%s2812_s22 + $0x40] sm:$0xff] (!%p1858_p5)  ;;  %v650_v22 = vld [vmem:[%s2812_s22 + $0x50] sm:$0xff] (!%p1858_p5)  ;;  %v657_v25 = vld [vmem:[%s2812_s22 + $0x88] sm:$0xff] (!%p1858_p5) }
  0x8b   : > { %1991 = vmatpush1.bf16.msra.mxu0 (!%p1858_p5), %v1990_v10  ;;  %v652_v21 = vld [vmem:[%s2812_s22 + $0x60] sm:$0xff] (!%p1858_p5)  ;;  %v654_v24 = vld [vmem:[%s2812_s22 + $0x70] sm:$0xff] (!%p1858_p5)  ;;  %v661_v26 = vld [vmem:[%s2812_s22 + $0xa8] sm:$0xff] (!%p1858_p5) }
  0x8c   : > { %2023 = vmatpush1.bf16.msra.mxu1 (!%p1858_p5), %v2022_v14  ;;  %v1994_v23 = vpack.c.bf16 (!%p1858_p5), %v652_v21, %v648_v20  ;;  %1993 = vmatprep.subr.bf16.mxu0 (!%p1858_p5), %v1992_v18  ;;  %v2026_v27 = vpack.c.bf16 (!%p1858_p5), %v654_v24, %v650_v22  ;;  %v1996_v28 = vpack.c.bf16 (!%p1858_p5), %v661_v26, %v657_v25  ;;  %v659_v29 = vld [vmem:[%s2812_s22 + $0x98] sm:$0xff] (!%p1858_p5)  ;;  %v656_v31 = vld [vmem:[%s2812_s22 + $0x80] sm:$0xff] (!%p1858_p5)  ;;  %v658_v34 = vld [vmem:[%s2812_s22 + $0x90] sm:$0xff] (!%p1858_p5) }
  0x8d   : > { %2025 = vmatprep.subr.bf16.mxu1 (!%p1858_p5), %v2024_v19  ;;  %v663_v30 = vld [vmem:[%s2812_s22 + $0xb8] sm:$0xff] (!%p1858_p5)  ;;  %v660_v33 = vld [vmem:[%s2812_s22 + $0xa0] sm:$0xff] (!%p1858_p5)  ;;  %v662_v35 = vld [vmem:[%s2812_s22 + $0xb0] sm:$0xff] (!%p1858_p5) }
  0x8e   : > { %v2028_v32 = vpack.c.bf16 %v663_v30, %v659_v29  ;;  %v1998_v36 = vpack.c.bf16 %v660_v33, %v656_v31  ;;  %v665_v37 = vld [vmem:[%s2812_s22 + $0xc8] sm:$0xff]  ;;  %v667_v39 = vld [vmem:[%s2812_s22 + $0xd8] sm:$0xff]  ;;  %v2030_v40 = vpack.c.bf16 %v662_v35, %v658_v34  ;;  %v664_v43 = vld [vmem:[%s2812_s22 + $0xc0] sm:$0xff] }
  0x8f   : > { %1995 = vmatpush1.bf16.msra.mxu0 %v1994_v23  ;;  %v669_v38 = vld [vmem:[%s2812_s22 + $0xe8] sm:$0xff]  ;;  %v671_v42 = vld [vmem:[%s2812_s22 + $0xf8] sm:$0xff]  ;;  %v668_v44 = vld [vmem:[%s2812_s22 + $0xe0] sm:$0xff] }
  0x90   : > { %2027 = vmatpush1.bf16.msra.mxu1 %v2026_v27  ;;  %1997 = vmatprep.subr.bf16.mxu0 %v1996_v28  ;;  %v2000_v41 = vpack.c.bf16 %v669_v38, %v665_v37  ;;  %v2032_v45 = vpack.c.bf16 %v671_v42, %v667_v39  ;;  %v666_v46 = vld [vmem:[%s2812_s22 + $0xd0] sm:$0xff]  ;;  %v673_v48 = vld [vmem:[%s2812_s22 + $0x108] sm:$0xff]  ;;  %v675_v50 = vld [vmem:[%s2812_s22 + $0x118] sm:$0xff]  ;;  %v2002_v52 = vpack.c.bf16 %v668_v44, %v664_v43 }
  0x91   : > { %2029 = vmatprep.subr.bf16.mxu1 %v2028_v32  ;;  %v670_v47 = vld [vmem:[%s2812_s22 + $0xf0] sm:$0xff]  ;;  %v677_v49 = vld [vmem:[%s2812_s22 + $0x128] sm:$0xff]  ;;  %v679_v51 = vld [vmem:[%s2812_s22 + $0x138] sm:$0xff] }
  0x92   : > { %v2034_v53 = vpack.c.bf16 %v670_v47, %v666_v46  ;;  %v2004_v54 = vpack.c.bf16 %v677_v49, %v673_v48  ;;  %v672_v55 = vld [vmem:[%s2812_s22 + $0x100] sm:$0xff]  ;;  %v674_v57 = vld [vmem:[%s2812_s22 + $0x110] sm:$0xff]  ;;  %v2036_v58 = vpack.c.bf16 %v679_v51, %v675_v50  ;;  %v681_v60 = vld [vmem:[%s2812_s22 + $0x148] sm:$0xff] }
  0x93   : > { %1999 = vmatpush1.bf16.msra.mxu0 %v1998_v36  ;;  %v676_v56 = vld [vmem:[%s2812_s22 + $0x120] sm:$0xff]  ;;  %v678_v59 = vld [vmem:[%s2812_s22 + $0x130] sm:$0xff]  ;;  %v685_v61 = vld [vmem:[%s2812_s22 + $0x168] sm:$0xff] }
  0x94   : > { %2031 = vmatpush1.bf16.msra.mxu1 %v2030_v40  ;;  %2001 = vmatprep.subr.bf16.mxu0 %v2000_v41  ;;  %v683_v62 = vld [vmem:[%s2812_s22 + $0x158] sm:$0xff]  ;;  %v2006_v0 = vpack.c.bf16 %v676_v56, %v672_v55  ;;  %v2038_v1 = vpack.c.bf16 %v678_v59, %v674_v57  ;;  %v2008_v2 = vpack.c.bf16 %v685_v61, %v681_v60  ;;  %v680_v3 = vld [vmem:[%s2812_s22 + $0x140] sm:$0xff]  ;;  %v682_v5 = vld [vmem:[%s2812_s22 + $0x150] sm:$0xff] }
  0x95   : > { %2033 = vmatprep.subr.bf16.mxu1 %v2032_v45  ;;  %v687_v63 = vld [vmem:[%s2812_s22 + $0x178] sm:$0xff]  ;;  %v684_v4 = vld [vmem:[%s2812_s22 + $0x160] sm:$0xff]  ;;  %v686_v7 = vld [vmem:[%s2812_s22 + $0x170] sm:$0xff] }
  0x96   : > { %v2040_v6 = vpack.c.bf16 %v687_v63, %v683_v62  ;;  %v689_v9 = vld [vmem:[%s2812_s22 + $0x188] sm:$0xff]  ;;  %v691_v11 = vld [vmem:[%s2812_s22 + $0x198] sm:$0xff]  ;;  %v2010_v13 = vpack.c.bf16 %v684_v4, %v680_v3  ;;  %v2042_v14 = vpack.c.bf16 %v686_v7, %v682_v5  ;;  %v688_v16 = vld [vmem:[%s2812_s22 + $0x180] sm:$0xff] }
  0x97   : > { %2003 = vmatpush1.bf16.msra.mxu0 %v2002_v52  ;;  %v693_v10 = vld [vmem:[%s2812_s22 + $0x1a8] sm:$0xff]  ;;  %v695_v12 = vld [vmem:[%s2812_s22 + $0x1b8] sm:$0xff]  ;;  %v692_v17 = vld [vmem:[%s2812_s22 + $0x1a0] sm:$0xff] }
  0x98   : > { %2035 = vmatpush1.bf16.msra.mxu1 %v2034_v53  ;;  %2005 = vmatprep.subr.bf16.mxu0 %v2004_v54  ;;  %v2012_v15 = vpack.c.bf16 %v693_v10, %v689_v9  ;;  %v690_v18 = vld [vmem:[%s2812_s22 + $0x190] sm:$0xff]  ;;  %v2044_v19 = vpack.c.bf16 %v695_v12, %v691_v11  ;;  %v697_v21 = vld [vmem:[%s2812_s22 + $0x1c8] sm:$0xff]  ;;  %v699_v23 = vld [vmem:[%s2812_s22 + $0x1d8] sm:$0xff]  ;;  %v2014_v25 = vpack.c.bf16 %v692_v17, %v688_v16 }
  0x99   : > { %2037 = vmatprep.subr.bf16.mxu1 %v2036_v58  ;;  %v694_v20 = vld [vmem:[%s2812_s22 + $0x1b0] sm:$0xff]  ;;  %v701_v22 = vld [vmem:[%s2812_s22 + $0x1e8] sm:$0xff]  ;;  %v703_v24 = vld [vmem:[%s2812_s22 + $0x1f8] sm:$0xff] }
  0x9a   : > { %v2046_v26 = vpack.c.bf16 %v694_v20, %v690_v18  ;;  %v2016_v27 = vpack.c.bf16 %v701_v22, %v697_v21  ;;  %v696_v28 = vld [vmem:[%s2812_s22 + $0x1c0] sm:$0xff]  ;;  %v698_v30 = vld [vmem:[%s2812_s22 + $0x1d0] sm:$0xff]  ;;  %v2048_v31 = vpack.c.bf16 %v703_v24, %v699_v23  ;;  %v907_v33 = vld [vmem:[%s2814_s23 + $0x8] sm:$0xff] }
  0x9b   : > { %2007 = vmatpush1.bf16.msra.mxu0 %v2006_v0  ;;  %v700_v29 = vld [vmem:[%s2812_s22 + $0x1e0] sm:$0xff]  ;;  %v702_v32 = vld [vmem:[%s2812_s22 + $0x1f0] sm:$0xff]  ;;  %v911_v34 = vld [vmem:[%s2814_s23 + $0x28] sm:$0xff] }
  0x9c   : > { %2039 = vmatpush1.bf16.msra.mxu1 %v2038_v1  ;;  %2009 = vmatprep.subr.bf16.mxu0 %v2008_v2  ;;  %v909_v35 = vld [vmem:[%s2814_s23 + $0x18] sm:$0xff]  ;;  %v2018_v37 = vpack.c.bf16 %v700_v29, %v696_v28  ;;  %v2050_v38 = vpack.c.bf16 %v702_v32, %v698_v30  ;;  %v2052_v39 = vpack.c.bf16 %v911_v34, %v907_v33  ;;  %v906_v40 = vld [vmem:[%s2814_s23] sm:$0xff]  ;;  %v908_v43 = vld [vmem:[%s2814_s23 + $0x10] sm:$0xff] }
  0x9d   : > { %2041 = vmatprep.subr.bf16.mxu1 %v2040_v6  ;;  %v913_v36 = vld [vmem:[%s2814_s23 + $0x38] sm:$0xff]  ;;  %v910_v41 = vld [vmem:[%s2814_s23 + $0x20] sm:$0xff]  ;;  %v912_v44 = vld [vmem:[%s2814_s23 + $0x30] sm:$0xff] }
  0x9e   : > { %v2084_v42 = vpack.c.bf16 %v913_v36, %v909_v35  ;;  %v915_v45 = vld [vmem:[%s2814_s23 + $0x48] sm:$0xff]  ;;  %v2894_v47 = vld [vmem:[%s2800_s28] sm:$0xff]  ;;  %v2054_v48 = vpack.c.bf16 %v910_v41, %v906_v40  ;;  %v917_v49 = vld [vmem:[%s2814_s23 + $0x58] sm:$0xff]  ;;  %v2086_v51 = vpack.c.bf16 %v912_v44, %v908_v43 }
  0x9f   : > { %2011 = vmatpush1.bf16.msra.mxu0 %v2010_v13  ;;  %v919_v46 = vld [vmem:[%s2814_s23 + $0x68] sm:$0xff]  ;;  %v921_v50 = vld [vmem:[%s2814_s23 + $0x78] sm:$0xff]  ;;  %v914_v52 = vld [vmem:[%s2814_s23 + $0x40] sm:$0xff] }
  0xa0   : > { %2043 = vmatpush1.bf16.msra.mxu1 %v2042_v14  ;;  %2013 = vmatprep.subr.bf16.mxu0 %v2012_v15  ;;  %v918_v53 = vld [vmem:[%s2814_s23 + $0x60] sm:$0xff]  ;;  %v2056_v54 = vpack.c.bf16 %v919_v46, %v915_v45  ;;  %v916_v55 = vld [vmem:[%s2814_s23 + $0x50] sm:$0xff]  ;;  %v2088_v57 = vpack.c.bf16 %v921_v50, %v917_v49  ;;  %v923_v58 = vld [vmem:[%s2814_s23 + $0x88] sm:$0xff] }
  0xa1   : > { %2045 = vmatprep.subr.bf16.mxu1 %v2044_v19  ;;  %v920_v56 = vld [vmem:[%s2814_s23 + $0x70] sm:$0xff]  ;;  %v927_v59 = vld [vmem:[%s2814_s23 + $0xa8] sm:$0xff]  ;;  %v2907_v60 = vld [vmem:[%s2800_s28 + $0x8] sm:$0xff]  ;;  %v2058_v61 = vpack.c.bf16 %v918_v53, %v914_v52 }
  0xa2   : > { %v925_v62 = vld [vmem:[%s2814_s23 + $0x98] sm:$0xff]  ;;  %v2090_v0 = vpack.c.bf16 %v920_v56, %v916_v55  ;;  %v922_v1 = vld [vmem:[%s2814_s23 + $0x80] sm:$0xff]  ;;  %v2060_v3 = vpack.c.bf16 %v927_v59, %v923_v58  ;;  %v924_v4 = vld [vmem:[%s2814_s23 + $0x90] sm:$0xff] }
  0xa3   : > { %2015 = vmatpush1.bf16.msra.mxu0 %v2014_v25  ;;  %v929_v63 = vld [vmem:[%s2814_s23 + $0xb8] sm:$0xff]  ;;  %v926_v2 = vld [vmem:[%s2814_s23 + $0xa0] sm:$0xff]  ;;  %v928_v5 = vld [vmem:[%s2814_s23 + $0xb0] sm:$0xff] }
  0xa4   : > { %2047 = vmatpush1.bf16.msra.mxu1 %v2046_v26  ;;  %2017 = vmatprep.subr.bf16.mxu0 %v2016_v27  ;;  %v2092_v6 = vpack.c.bf16 %v929_v63, %v925_v62  ;;  %v931_v7 = vld [vmem:[%s2814_s23 + $0xc8] sm:$0xff]  ;;  %v2922_v10 = vld [vmem:[%s2800_s28 + $0x10] sm:$0xff]  ;;  %v2062_v11 = vpack.c.bf16 %v926_v2, %v922_v1  ;;  %v933_v12 = vld [vmem:[%s2814_s23 + $0xd8] sm:$0xff]  ;;  %v2094_v14 = vpack.c.bf16 %v928_v5, %v924_v4 }
  0xa5   : > { %2049 = vmatprep.subr.bf16.mxu1 %v2048_v31  ;;  %v935_v9 = vld [vmem:[%s2814_s23 + $0xe8] sm:$0xff]  ;;  %v937_v13 = vld [vmem:[%s2814_s23 + $0xf8] sm:$0xff]  ;;  %v930_v15 = vld [vmem:[%s2814_s23 + $0xc0] sm:$0xff] }
  0xa6   : > { %v934_v16 = vld [vmem:[%s2814_s23 + $0xe0] sm:$0xff]  ;;  %v2064_v17 = vpack.c.bf16 %v935_v9, %v931_v7  ;;  %v932_v18 = vld [vmem:[%s2814_s23 + $0xd0] sm:$0xff]  ;;  %v2096_v20 = vpack.c.bf16 %v937_v13, %v933_v12  ;;  %v939_v21 = vld [vmem:[%s2814_s23 + $0x108] sm:$0xff] }
  0xa7   : > { %2019 = vmatpush1.bf16.msra.mxu0 %v2018_v37  ;;  %v936_v19 = vld [vmem:[%s2814_s23 + $0xf0] sm:$0xff]  ;;  %v943_v22 = vld [vmem:[%s2814_s23 + $0x128] sm:$0xff]  ;;  %v2066_v24 = vpack.c.bf16 %v934_v16, %v930_v15  ;;  %v941_v25 = vld [vmem:[%s2814_s23 + $0x118] sm:$0xff] }
  0xa8   : > { %2051 = vmatpush1.bf16.msra.mxu1 %v2050_v38  ;;  %2053 = vmatprep.subr.bf16.mxu0 %v2052_v39  ;;  %v2937_v23 = vld [vmem:[%s2800_s28 + $0x18] sm:$0xff]  ;;  %v945_v26 = vld [vmem:[%s2814_s23 + $0x138] sm:$0xff]  ;;  %v2098_v27 = vpack.c.bf16 %v936_v19, %v932_v18  ;;  %v938_v28 = vld [vmem:[%s2814_s23 + $0x100] sm:$0xff]  ;;  %v2068_v30 = vpack.c.bf16 %v943_v22, %v939_v21 }
  0xa9   : > { %2085 = vmatprep.subr.bf16.mxu1 %v2084_v42  ;;  %v942_v29 = vld [vmem:[%s2814_s23 + $0x120] sm:$0xff]  ;;  %v940_v31 = vld [vmem:[%s2814_s23 + $0x110] sm:$0xff]  ;;  %v2100_v33 = vpack.c.bf16 %v945_v26, %v941_v25  ;;  %v947_v34 = vld [vmem:[%s2814_s23 + $0x148] sm:$0xff] }
  0xaa   : > { %769 = vmatmul.mubr.f32.vlgmr.msra.gmra.mrb[0].mxu0 %v2894_v47  ;;  %v944_v32 = vld [vmem:[%s2814_s23 + $0x130] sm:$0xff]  ;;  %v951_v35 = vld [vmem:[%s2814_s23 + $0x168] sm:$0xff]  ;;  %v2070_v37 = vpack.c.bf16 %v942_v29, %v938_v28  ;;  %v949_v38 = vld [vmem:[%s2814_s23 + $0x158] sm:$0xff] }
  0xab   : > { %870 = vmatmul.mubr.f32.vlgmr.msra.gmra.mrb[0].mxu1 %v2894_v47  ;;  %2055 = vmatpush1.bf16.msra.mxu0 %v2054_v48  ;;  %v2952_v36 = vld [vmem:[%s2800_s28 + $0x20] sm:$0xff]  ;;  %v953_v39 = vld [vmem:[%s2814_s23 + $0x178] sm:$0xff]  ;;  %v2102_v40 = vpack.c.bf16 %v944_v32, %v940_v31  ;;  %v946_v41 = vld [vmem:[%s2814_s23 + $0x140] sm:$0xff]  ;;  %v2072_v44 = vpack.c.bf16 %v951_v35, %v947_v34 }
  0xac   : > { %2087 = vmatpush1.bf16.msra.mxu1 %v2086_v51  ;;  %774 = vmatprep.mubr.f32.mxu0 %v2407_v8  ;;  %v950_v42 = vld [vmem:[%s2814_s23 + $0x160] sm:$0xff]  ;;  %v948_v43 = vld [vmem:[%s2814_s23 + $0x150] sm:$0xff]  ;;  %v955_v46 = vld [vmem:[%s2814_s23 + $0x188] sm:$0xff]  ;;  %v2104_v49 = vpack.c.bf16 %v953_v39, %v949_v38 }
  0xad   : > { %875 = vmatprep.mubr.f32.mxu1 %v2407_v8  ;;  %2057 = vmatprep.subr.bf16.mxu0 %v2056_v54  ;;  %v952_v45 = vld [vmem:[%s2814_s23 + $0x170] sm:$0xff]  ;;  %v959_v48 = vld [vmem:[%s2814_s23 + $0x1a8] sm:$0xff]  ;;  %v957_v50 = vld [vmem:[%s2814_s23 + $0x198] sm:$0xff]  ;;  %v2074_v53 = vpack.c.bf16 %v950_v42, %v946_v41 }
  0xae   : > { %775 = vmatmul.mubr.f32.gmra.mrb[2].mxu0 %v2907_v60  ;;  %2089 = vmatprep.subr.bf16.mxu1 %v2088_v57  ;;  %v961_v51 = vld [vmem:[%s2814_s23 + $0x1b8] sm:$0xff]  ;;  %v2106_v54 = vpack.c.bf16 %v952_v45, %v948_v43  ;;  %v2076_v55 = vpack.c.bf16 %v959_v48, %v955_v46  ;;  %v954_v56 = vld [vmem:[%s2814_s23 + $0x180] sm:$0xff]  ;;  %v956_v58 = vld [vmem:[%s2814_s23 + $0x190] sm:$0xff] }
  0xaf   : > { %876 = vmatmul.mubr.f32.gmra.mrb[2].mxu1 %v2907_v60  ;;  %2059 = vmatpush1.bf16.msra.mxu0 %v2058_v61  ;;  %v639_v52 = vld [vmem:[%s2800_s28 + $0x28] sm:$0xff]  ;;  %v958_v57 = vld [vmem:[%s2814_s23 + $0x1a0] sm:$0xff]  ;;  %v2108_v59 = vpack.c.bf16 %v961_v51, %v957_v50  ;;  %v960_v61 = vld [vmem:[%s2814_s23 + $0x1b0] sm:$0xff] }
  0xb0   : > { %2091 = vmatpush1.bf16.msra.mxu1 %v2090_v0  ;;  %780 = vmatprep.mubr.f32.mxu0 %v2407_v8  ;;  %v963_v62 = vld [vmem:[%s2814_s23 + $0x1c8] sm:$0xff]  ;;  %v965_v0 = vld [vmem:[%s2814_s23 + $0x1d8] sm:$0xff]  ;;  %v2078_v2 = vpack.c.bf16 %v958_v57, %v954_v56  ;;  %v962_v5 = vld [vmem:[%s2814_s23 + $0x1c0] sm:$0xff] }
  0xb1   : > { %881 = vmatprep.mubr.f32.mxu1 %v2407_v8  ;;  %2061 = vmatprep.subr.bf16.mxu0 %v2060_v3  ;;  %v967_v63 = vld [vmem:[%s2814_s23 + $0x1e8] sm:$0xff]  ;;  %v969_v1 = vld [vmem:[%s2814_s23 + $0x1f8] sm:$0xff]  ;;  %v2110_v3 = vpack.c.bf16 %v960_v61, %v956_v58  ;;  %v964_v9 = vld [vmem:[%s2814_s23 + $0x1d0] sm:$0xff] }
  0xb2   : > { %781 = vmatmul.mubr.f32.gmra.mrb[4].mxu0 %v2922_v10  ;;  %2093 = vmatprep.subr.bf16.mxu1 %v2092_v6  ;;  %v2080_v4 = vpack.c.bf16 %v967_v63, %v963_v62  ;;  %v966_v6 = vld [vmem:[%s2814_s23 + $0x1e0] sm:$0xff]  ;;  %v2112_v7 = vpack.c.bf16 %v969_v1, %v965_v0  ;;  %v1419_v15 = vld [vmem:[%s2810_s15 + $0x188] sm:$0xff]  ;;  %v1370_v16 = vld [vmem:[%s2810_s15] sm:$0xff] }
  0xb3   : > { %882 = vmatmul.mubr.f32.gmra.mrb[4].mxu1 %v2922_v10  ;;  %2063 = vmatpush1.bf16.msra.mxu0 %v2062_v11  ;;  %v968_v11 = vld [vmem:[%s2814_s23 + $0x1f0] sm:$0xff]  ;;  %v2082_v12 = vpack.c.bf16 %v966_v6, %v962_v5  ;;  %v1388_v22 = vld [vmem:[%s2810_s15 + $0x90] sm:$0xff]  ;;  %v1421_v26 = vld [vmem:[%s2810_s15 + $0x198] sm:$0xff] }
  0xb4   : > { %2095 = vmatpush1.bf16.msra.mxu1 %v2094_v14  ;;  %786 = vmatprep.mubr.f32.mxu0 %v2407_v8  ;;  %v2114_v13 = vpack.c.bf16 %v968_v11, %v964_v9  ;;  %v1373_v28 = vld [vmem:[%s2810_s15 + $0x18] sm:$0xff]  ;;  %v1404_v31 = vld [vmem:[%s2810_s15 + $0x110] sm:$0xff]  ;;  %v1390_v34 = vld [vmem:[%s2810_s15 + $0xa0] sm:$0xff] }
  0xb5   : > { %887 = vmatprep.mubr.f32.mxu1 %v2407_v8  ;;  %2065 = vmatprep.subr.bf16.mxu0 %v2064_v17  ;;  %v1371_v17 = vld [vmem:[%s2810_s15 + $0x8] sm:$0xff]  ;;  %v1405_v32 = vld [vmem:[%s2810_s15 + $0x118] sm:$0xff]  ;;  %v1374_v39 = vld [vmem:[%s2810_s15 + $0x20] sm:$0xff] }
  0xb6   : > { %787 = vmatmul.mubr.f32.gmra.mrb[6].mxu0 %v2937_v23  ;;  %2097 = vmatprep.subr.bf16.mxu1 %v2096_v20  ;;  %v2118_v19 = vpack.c.bf16 %v1371_v17, %v1370_v16  ;;  %v1402_v20 = vld [vmem:[%s2810_s15 + $0x100] sm:$0xff]  ;;  %v1391_v35 = vld [vmem:[%s2810_s15 + $0xa8] sm:$0xff]  ;;  %v1392_v46 = vld [vmem:[%s2810_s15 + $0xb0] sm:$0xff] }
  0xb7   : > { %888 = vmatmul.mubr.f32.gmra.mrb[6].mxu1 %v2937_v23  ;;  %2067 = vmatpush1.bf16.msra.mxu0 %v2066_v24  ;;  %v1420_v24 = vld [vmem:[%s2810_s15 + $0x190] sm:$0xff]  ;;  %v1423_v38 = vld [vmem:[%s2810_s15 + $0x1a8] sm:$0xff]  ;;  %v1406_v43 = vld [vmem:[%s2810_s15 + $0x120] sm:$0xff] }
  0xb8   : > { %2099 = vmatpush1.bf16.msra.mxu1 %v2098_v27  ;;  %792 = vmatprep.mubr.f32.mxu0 %v2407_v8  ;;  %v1372_v27 = vld [vmem:[%s2810_s15 + $0x10] sm:$0xff]  ;;  %v2152_v29 = vpack.c.bf16 %v1421_v26, %v1420_v24  ;;  %v1393_v48 = vld [vmem:[%s2810_s15 + $0xb8] sm:$0xff]  ;;  %v1395_v61 = vld [vmem:[%s2810_s15 + $0xc8] sm:$0xff] }
  0xb9   : > { %893 = vmatprep.mubr.f32.mxu1 %v2407_v8  ;;  %2069 = vmatprep.subr.bf16.mxu0 %v2068_v30  ;;  %v2122_v30 = vpack.c.bf16 %v1373_v28, %v1372_v27  ;;  %v2128_v50 = vpack.c.bf16 %v1393_v48, %v1392_v46  ;;  %v1425_v51 = vld [vmem:[%s2810_s15 + $0x1b8] sm:$0xff]  ;;  %v1408_v56 = vld [vmem:[%s2810_s15 + $0x130] sm:$0xff]  ;;  %v1426_v62 = vld [vmem:[%s2810_s15 + $0x1c0] sm:$0xff] }
  0xba   : > { %793 = vmatmul.mubr.f32.gmra.mrb[8].mxu0 %v2952_v36  ;;  %2101 = vmatprep.subr.bf16.mxu1 %v2100_v33  ;;  %v2154_v33 = vpack.c.bf16 %v1405_v32, %v1404_v31  ;;  %v1409_v57 = vld [vmem:[%s2810_s15 + $0x138] sm:$0xff]  ;;  %v1427_v0 = vld [vmem:[%s2810_s15 + $0x1c8] sm:$0xff]  ;;  %v1378_v1 = vld [vmem:[%s2810_s15 + $0x40] sm:$0xff] }
  0xbb   : > { %894 = vmatmul.mubr.f32.gmra.mrb[8].mxu1 %v2952_v36  ;;  %2071 = vmatpush1.bf16.msra.mxu0 %v2070_v37  ;;  %v2124_v37 = vpack.c.bf16 %v1391_v35, %v1390_v34  ;;  %v2162_v58 = vpack.c.bf16 %v1409_v57, %v1408_v56  ;;  %v1410_v5 = vld [vmem:[%s2810_s15 + $0x140] sm:$0xff]  ;;  %v1411_v6 = vld [vmem:[%s2810_s15 + $0x148] sm:$0xff]  ;;  %v1396_v9 = vld [vmem:[%s2810_s15 + $0xd0] sm:$0xff] }
  0xbc   : > { %2103 = vmatpush1.bf16.msra.mxu1 %v2102_v40  ;;  %798 = vmatprep.mubr.f32.mxu0 %v2407_v8  ;;  %v1375_v40 = vld [vmem:[%s2810_s15 + $0x28] sm:$0xff]  ;;  %v1397_v11 = vld [vmem:[%s2810_s15 + $0xd8] sm:$0xff]  ;;  %v1412_v16 = vld [vmem:[%s2810_s15 + $0x150] sm:$0xff] }
  0xbd   : > { %899 = vmatprep.mubr.f32.mxu1 %v2407_v8  ;;  %2073 = vmatprep.subr.bf16.mxu0 %v2072_v44  ;;  %v2126_v42 = vpack.c.bf16 %v1375_v40, %v1374_v39  ;;  %v1407_v44 = vld [vmem:[%s2810_s15 + $0x128] sm:$0xff]  ;;  %v1413_v17 = vld [vmem:[%s2810_s15 + $0x158] sm:$0xff]  ;;  %v1414_v27 = vld [vmem:[%s2810_s15 + $0x160] sm:$0xff] }
  0xbe   : > { %799 = vmatmul.mubr.f32.gmra.mrb[10].mxu0 %v639_v52  ;;  %2105 = vmatprep.subr.bf16.mxu1 %v2104_v49  ;;  %v2158_v45 = vpack.c.bf16 %v1407_v44, %v1406_v43  ;;  %v1424_v49 = vld [vmem:[%s2810_s15 + $0x1b0] sm:$0xff]  ;;  %v1383_v24 = vld [vmem:[%s2810_s15 + $0x68] sm:$0xff]  ;;  %v1401_v31 = vld [vmem:[%s2810_s15 + $0xf8] sm:$0xff] }
  0xbf   : > { %900 = vmatmul.mubr.f32.gmra.mrb[10].mxu1 %v639_v52  ;;  %2075 = vmatpush1.bf16.msra.mxu0 %v2074_v53  ;;  %v1377_v53 = vld [vmem:[%s2810_s15 + $0x38] sm:$0xff]  ;;  %v1415_v28 = vld [vmem:[%s2810_s15 + $0x168] sm:$0xff]  ;;  %v1432_v32 = vld [vmem:[%s2810_s15 + $0x1f0] sm:$0xff] }
  0xc0   : > { %2107 = vmatpush1.bf16.msra.mxu1 %v2106_v54  ;;  %2077 = vmatprep.subr.bf16.mxu0 %v2076_v55  ;;  %v2160_v54 = vpack.c.bf16 %v1425_v51, %v1424_v49  ;;  %v1433_v34 = vld [vmem:[%s2810_s15 + $0x1f8] sm:$0xff]  ;;  %v1384_v35 = vld [vmem:[%s2810_s15 + $0x70] sm:$0xff] }
  0xc1   : > { %2109 = vmatprep.subr.bf16.mxu1 %v2108_v59  ;;  %1034 = vmatprep.mubr.f32.mxu0 %v2407_v8  ;;  %v1394_v59 = vld [vmem:[%s2810_s15 + $0xc0] sm:$0xff]  ;;  %v1416_v39 = vld [vmem:[%s2810_s15 + $0x170] sm:$0xff]  ;;  %v1417_v40 = vld [vmem:[%s2810_s15 + $0x178] sm:$0xff] }
  0xc2   : > { %1135 = vmatprep.mubr.f32.mxu1 %v2407_v8  ;;  %v2132_v63 = vpack.c.bf16 %v1395_v61, %v1394_v59 }
  0xc3   : > { %2079 = vmatpush1.bf16.msra.mxu0 %v2078_v2  ;;  %v1379_v2 = vld [vmem:[%s2810_s15 + $0x48] sm:$0xff] }
  0xc4   : > { %2111 = vmatpush1.bf16.msra.mxu1 %v2110_v3  ;;  %2081 = vmatprep.subr.bf16.mxu0 %v2080_v4  ;;  %v2164_v3 = vpack.c.bf16 %v1427_v0, %v1426_v62  ;;  %v2134_v4 = vpack.c.bf16 %v1379_v2, %v1378_v1 }
  0xc5   : > { %2113 = vmatprep.subr.bf16.mxu1 %v2112_v7  ;;  %v2166_v7 = vpack.c.bf16 %v1411_v6, %v1410_v5 }
  0xc7   : > { %2083 = vmatpush1.bf16.msra.mxu0 %v2082_v12  ;;  %v1428_v12 = vld [vmem:[%s2810_s15 + $0x1d0] sm:$0xff] }
  0xc8   : > { %2115 = vmatpush1.bf16.msra.mxu1 %v2114_v13  ;;  %v2136_v13 = vpack.c.bf16 %v1397_v11, %v1396_v9 }
  0xca   : > { %1035 = vmatmul.mubr.f32.vlgmr.msra.gmra.mrb[12].mxu0 %v2894_v47 }
  0xcb   : > { %1136 = vmatmul.mubr.f32.vlgmr.msra.gmra.mrb[12].mxu1 %v2894_v47  ;;  %1040 = vmatprep.mubr.f32.mxu0 %v2407_v8  ;;  %v1386_v47 = vld [vmem:[%s2810_s15 + $0x80] sm:$0xff] }
  0xcc   : > { %1141 = vmatprep.mubr.f32.mxu1 %v2407_v8 }
  0xce   : > { %1041 = vmatmul.mubr.f32.gmra.mrb[14].mxu0 %v2907_v60 }
  0xcf   : > { %1142 = vmatmul.mubr.f32.gmra.mrb[14].mxu1 %v2907_v60  ;;  %1046 = vmatprep.mubr.f32.mxu0 %v2407_v8  ;;  %v1387_v60 = vld [vmem:[%s2810_s15 + $0x88] sm:$0xff] }
  0xd0   : > { %1147 = vmatprep.mubr.f32.mxu1 %v2407_v8  ;;  %v2116_v14 = vpack.c.bf16 %v1387_v60, %v1386_v47  ;;  %v1429_v47 = vld [vmem:[%s2810_s15 + $0x1d8] sm:$0xff]  ;;  %v1380_v60 = vld [vmem:[%s2810_s15 + $0x50] sm:$0xff] }
  0xd2   : > { %1047 = vmatmul.mubr.f32.gmra.mrb[16].mxu0 %v2922_v10  ;;  %2117 = vmatprep.subr.bf16.mxu0 %v2116_v14  ;;  %v2168_v14 = vpack.c.bf16 %v1429_v47, %v1428_v12 }
  0xd3   : > { %1148 = vmatmul.mubr.f32.gmra.mrb[16].mxu1 %v2922_v10  ;;  %1052 = vmatprep.mubr.f32.mxu0 %v2407_v8  ;;  %v1418_v10 = vld [vmem:[%s2810_s15 + $0x180] sm:$0xff] }
  0xd4   : > { %1153 = vmatprep.mubr.f32.mxu1 %v2407_v8  ;;  %v2148_v18 = vpack.c.bf16 %v1419_v15, %v1418_v10  ;;  %2119 = vmatpush3.bf16.msra.mxu0 %v2118_v19  ;;  %v1381_v10 = vld [vmem:[%s2810_s15 + $0x58] sm:$0xff]  ;;  %v1398_v19 = vld [vmem:[%s2810_s15 + $0xe0] sm:$0xff] }
  0xd5   : > { %v2138_v15 = vpack.c.bf16 %v1381_v10, %v1380_v60 }
  0xd6   : > { %1053 = vmatmul.mubr.f32.gmra.mrb[18].mxu0 %v2937_v23  ;;  %2149 = vmatprep.subr.bf16.mxu1 %v2148_v18  ;;  %v2170_v18 = vpack.c.bf16 %v1413_v17, %v1412_v16 }
  0xd7   : > { %1154 = vmatmul.mubr.f32.gmra.mrb[18].mxu1 %v2937_v23  ;;  %1058 = vmatprep.mubr.f32.mxu0 %v2407_v8  ;;  %v1389_v23 = vld [vmem:[%s2810_s15 + $0x98] sm:$0xff] }
  0xd8   : > { %1159 = vmatprep.mubr.f32.mxu1 %v2407_v8  ;;  %v2120_v25 = vpack.c.bf16 %v1389_v23, %v1388_v22  ;;  %v1431_v22 = vld [vmem:[%s2810_s15 + $0x1e8] sm:$0xff]  ;;  %v1382_v23 = vld [vmem:[%s2810_s15 + $0x60] sm:$0xff] }
  0xd9   : > { %v2142_v26 = vpack.c.bf16 %v1383_v24, %v1382_v23 }
  0xda   : > { %1059 = vmatmul.mubr.f32.gmra.mrb[20].mxu0 %v2952_v36  ;;  %2121 = vmatprep.subr.bf16.mxu0 %v2120_v25 }
  0xdb   : > { %1160 = vmatmul.mubr.f32.gmra.mrb[20].mxu1 %v2952_v36  ;;  %1064 = vmatprep.mubr.f32.mxu0 %v2407_v8  ;;  %v1422_v36 = vld [vmem:[%s2810_s15 + $0x1a0] sm:$0xff] }
  0xdc   : > { %1165 = vmatprep.mubr.f32.mxu1 %v2407_v8  ;;  %v1403_v8 = vld [vmem:[%s2810_s15 + $0x108] sm:$0xff]  ;;  %2123 = vmatpush3.bf16.msra.mxu0 %v2122_v30  ;;  %v2156_v41 = vpack.c.bf16 %v1423_v38, %v1422_v36  ;;  %v1400_v30 = vld [vmem:[%s2810_s15 + $0xf0] sm:$0xff]  ;;  %v1385_v36 = vld [vmem:[%s2810_s15 + $0x78] sm:$0xff] }
  0xdd   : > { %v2150_v21 = vpack.c.bf16 %v1403_v8, %v1402_v20  ;;  %2125 = vmatprep.subr.bf16.mxu0 %v2124_v37  ;;  %v1399_v20 = vld [vmem:[%s2810_s15 + $0xe8] sm:$0xff]  ;;  %v1430_v8 = vld [vmem:[%s2810_s15 + $0x1e0] sm:$0xff]  ;;  %v2176_v37 = vpack.c.bf16 %v1433_v34, %v1432_v32  ;;  %v2146_v38 = vpack.c.bf16 %v1385_v36, %v1384_v35 }
  0xde   : > { %1065 = vmatmul.mubr.f32.gmra.mrb[22].mxu0 %v639_v52  ;;  %v2172_v25 = vpack.c.bf16 %v1431_v22, %v1430_v8 }
  0xdf   : > { %1166 = vmatmul.mubr.f32.gmra.mrb[22].mxu1 %v639_v52  ;;  %v1376_v52 = vld [vmem:[%s2810_s15 + $0x30] sm:$0xff] }
  0xe0   : > { %2151 = vmatpush3.bf16.msra.mxu1 %v2150_v21  ;;  %2127 = vmatpush3.bf16.msra.mxu0 %v2126_v42  ;;  %v2130_v55 = vpack.c.bf16 %v1377_v53, %v1376_v52  ;;  %v2140_v21 = vpack.c.bf16 %v1399_v20, %v1398_v19 }
  0xe1   : > { %2153 = vmatprep.subr.bf16.mxu1 %v2152_v29  ;;  %2129 = vmatprep.subr.bf16.mxu0 %v2128_v50  ;;  %v2174_v29 = vpack.c.bf16 %v1415_v28, %v1414_v27 }
  0xe4   : > { %2155 = vmatpush3.bf16.msra.mxu1 %v2154_v33  ;;  %2131 = vmatpush3.bf16.msra.mxu0 %v2130_v55  ;;  %v2144_v33 = vpack.c.bf16 %v1401_v31, %v1400_v30 }
  0xe5   : > { %2157 = vmatprep.subr.bf16.mxu1 %v2156_v41  ;;  %2133 = vmatprep.subr.bf16.mxu0 %v2132_v63  ;;  %v2178_v41 = vpack.c.bf16 %v1417_v40, %v1416_v39 }
  0xe8   : > { %2159 = vmatpush3.bf16.msra.mxu1 %v2158_v45  ;;  %2135 = vmatpush3.bf16.msra.mxu0 %v2134_v4 }
  0xe9   : > { %2161 = vmatprep.subr.bf16.mxu1 %v2160_v54  ;;  %2137 = vmatprep.subr.bf16.mxu0 %v2136_v13 }
  0xec   : > { %2163 = vmatpush3.bf16.msra.mxu1 %v2162_v58  ;;  %2139 = vmatpush3.bf16.msra.mxu0 %v2138_v15 }
  0xed   : > { %2165 = vmatprep.subr.bf16.mxu1 %v2164_v3  ;;  %2141 = vmatprep.subr.bf16.mxu0 %v2140_v21 }
  0xf0   : > { %2167 = vmatpush3.bf16.msra.mxu1 %v2166_v7  ;;  %2143 = vmatpush3.bf16.msra.mxu0 %v2142_v26 }
  0xf1   : > { %2169 = vmatprep.subr.bf16.mxu1 %v2168_v14  ;;  %2145 = vmatprep.subr.bf16.mxu0 %v2144_v33 }
  0xf4   : > { %2171 = vmatpush3.bf16.msra.mxu1 %v2170_v18  ;;  %2147 = vmatpush3.bf16.msra.mxu0 %v2146_v38 }
  0xf5   : > { %2173 = vmatprep.subr.bf16.mxu1 %v2172_v25 }
  0xf8   : > { %2175 = vmatpush3.bf16.msra.mxu1 %v2174_v29 }
  0xf9   : > { %2177 = vmatprep.subr.bf16.mxu1 %v2176_v37 }
  0xfc   : > { %2179 = vmatpush3.bf16.msra.mxu1 %v2178_v41 }
 0x17d   : > { %v3069_v42 = vpop.f32.mrb[0].mxu0 }
 0x17e   : > { %v1859_v43 = vmul.f32 -1.442695, %v3069_v42  ;;  %v3072_v44 = vpop.f32.mrb[0].mxu1  ;;  %v3074_v45 = vpop.f32.mrb[1].mxu0 }
 0x17f   : > { %v1861_v46 = vmul.f32 -1.442695, %v3072_v44  ;;  %v1860_v48 = vmul.f32 -1.442695, %v3074_v45  ;;  %v3078_v49 = vpop.f32.mrb[1].mxu1 }
 0x180   : > { %2239 = vpow2.f32 %v1859_v43  ;;  %v1862_v50 = vmul.f32 -1.442695, %v3078_v49 }
 0x181   : > { %2241 = vpow2.f32 %v1861_v46  ;;  %v3081_v51 = vpop.f32.mrb[2].mxu0 }
 0x182   : > { %2243 = vpow2.f32 %v1860_v48  ;;  %v1863_v52 = vmul.f32 -1.442695, %v3081_v51  ;;  %v3084_v53 = vpop.f32.mrb[2].mxu1  ;;  %v3086_v54 = vpop.f32.mrb[3].mxu0 }
 0x183   : > { %2245 = vpow2.f32 %v1862_v50  ;;  %v1865_v55 = vmul.f32 -1.442695, %v3084_v53  ;;  %v1864_v56 = vmul.f32 -1.442695, %v3086_v54  ;;  %v3090_v57 = vpop.f32.mrb[3].mxu1 }
 0x184   : > { %2247 = vpow2.f32 %v1863_v52  ;;  %v1866_v58 = vmul.f32 -1.442695, %v3090_v57 }
 0x185   : > { %2249 = vpow2.f32 %v1865_v55  ;;  %v3093_v59 = vpop.f32.mrb[4].mxu0 }
 0x186   : > { %2251 = vpow2.f32 %v1864_v56  ;;  %v1867_v61 = vmul.f32 -1.442695, %v3093_v59  ;;  %v3096_v62 = vpop.f32.mrb[4].mxu1  ;;  %v3098_v63 = vpop.f32.mrb[5].mxu0 }
 0x187   : > { %2253 = vpow2.f32 %v1866_v58  ;;  %v1869_v0 = vmul.f32 -1.442695, %v3096_v62  ;;  %v1868_v1 = vmul.f32 -1.442695, %v3098_v63  ;;  %v3102_v2 = vpop.f32.mrb[5].mxu1 }
 0x188   : > { %2255 = vpow2.f32 %v1867_v61  ;;  %v1870_v3 = vmul.f32 -1.442695, %v3102_v2 }
 0x189   : > { %2257 = vpow2.f32 %v1869_v0  ;;  %v3105_v4 = vpop.f32.mrb[6].mxu0 }
 0x18a   : > { %v2240_v5 = vpop.eup %2239  ;;  %2259 = vpow2.f32 %v1868_v1  ;;  %v1871_v6 = vmul.f32 -1.442695, %v3105_v4  ;;  %v3108_v7 = vpop.f32.mrb[6].mxu1 }
 0x18b   : > { %v3110_v9 = vpop.f32.mrb[7].mxu0  ;;  %v2242_v11 = vpop.eup %2241  ;;  %v1244_v12 = vadd.f32 1.0, %v2240_v5  ;;  %2261 = vpow2.f32 %v1870_v3  ;;  %v1873_v40 = vmul.f32 -1.442695, %v3108_v7 }
 0x18c   : > { %v3112_v13 = vpop.f32.mrb[7].mxu1  ;;  %v2244_v47 = vpop.eup %2243  ;;  %v1246_v60 = vadd.f32 1.0, %v2242_v11  ;;  %2263 = vpow2.f32 %v1871_v6  ;;  %v1872_v46 = vmul.f32 -1.442695, %v3110_v9 }
 0x18d   : > { %v2246_v10 = vpop.eup %2245  ;;  %2265 = vrcp.f32 %v1244_v12  ;;  %v1245_v14 = vadd.f32 1.0, %v2244_v47  ;;  %v3114_v15 = vpop.f32.mrb[8].mxu0  ;;  %v1874_v50 = vmul.f32 -1.442695, %v3112_v13 }
 0x18e   : > { %v2248_v16 = vpop.eup %2247  ;;  %2267 = vrcp.f32 %v1246_v60  ;;  %v1247_v17 = vadd.f32 1.0, %v2246_v10  ;;  %v3116_v18 = vpop.f32.mrb[8].mxu1  ;;  %v1875_v55 = vmul.f32 -1.442695, %v3114_v15 }
 0x18f   : > { %v3118_v19 = vpop.f32.mrb[9].mxu0  ;;  %v2250_v20 = vpop.eup %2249  ;;  %2269 = vrcp.f32 %v1245_v14  ;;  %v1248_v8 = vadd.f32 1.0, %v2248_v16  ;;  %v1877_v58 = vmul.f32 -1.442695, %v3116_v18 }
 0x190   : > { %v3120_v21 = vpop.f32.mrb[9].mxu1  ;;  %v2252_v22 = vpop.eup %2251  ;;  %2271 = vrcp.f32 %v1247_v17  ;;  %v1250_v23 = vadd.f32 1.0, %v2250_v20  ;;  %v1876_v0 = vmul.f32 -1.442695, %v3118_v19 }
 0x191   : > { %v2254_v24 = vpop.eup %2253  ;;  %2273 = vrcp.f32 %v1248_v8  ;;  %v1249_v25 = vadd.f32 1.0, %v2252_v22  ;;  %v3122_v26 = vpop.f32.mrb[10].mxu0  ;;  %v1878_v5 = vmul.f32 -1.442695, %v3120_v21 }
 0x192   : > { %v2256_v27 = vpop.eup %2255  ;;  %2275 = vrcp.f32 %v1250_v23  ;;  %v1251_v28 = vadd.f32 1.0, %v2254_v24  ;;  %v3124_v29 = vpop.f32.mrb[10].mxu1  ;;  %v1879_v47 = vmul.f32 -1.442695, %v3122_v26 }
 0x193   : > { %v3126_v30 = vpop.f32.mrb[11].mxu0  ;;  %v2258_v31 = vpop.eup %2257  ;;  %2277 = vrcp.f32 %v1249_v25  ;;  %v1252_v32 = vadd.f32 1.0, %v2256_v27  ;;  %v1881_v16 = vmul.f32 -1.442695, %v3124_v29 }
 0x194   : > { %v3128_v33 = vpop.f32.mrb[11].mxu1  ;;  %v2260_v34 = vpop.eup %2259  ;;  %2279 = vrcp.f32 %v1251_v28  ;;  %v1254_v35 = vadd.f32 1.0, %v2258_v31  ;;  %v1880_v22 = vmul.f32 -1.442695, %v3126_v30 }
 0x195   : > { %v2262_v36 = vpop.eup %2261  ;;  %2281 = vrcp.f32 %v1252_v32  ;;  %v1253_v37 = vadd.f32 1.0, %v2260_v34  ;;  %v1882_v27 = vmul.f32 -1.442695, %v3128_v33 }
 0x196   : > { %v2264_v38 = vpop.eup %2263  ;;  %2283 = vrcp.f32 %v1254_v35  ;;  %v1255_v39 = vadd.f32 1.0, %v2262_v36 }
 0x197   : > { %v2266_v41 = vpop.eup %2265  ;;  %2285 = vrcp.f32 %v1253_v37  ;;  %v1256_v43 = vadd.f32 1.0, %v2264_v38 }
 0x198   : > { %v2268_v48 = vpop.eup %2267  ;;  %2287 = vrcp.f32 %v1255_v39  ;;  %v1316_v3 = vmul.f32 %v2266_v41, %v3069_v42 }
 0x199   : > { %v2270_v52 = vpop.eup %2269  ;;  %2289 = vrcp.f32 %v1256_v43  ;;  %v1318_v11 = vmul.f32 %v2268_v48, %v3072_v44 }
 0x19a   : > { %v2272_v56 = vpop.eup %2271  ;;  %2291 = vpow2.f32 %v1873_v40  ;;  %v1317_v12 = vmul.f32 %v2270_v52, %v3074_v45 }
 0x19b   : > { %v2274_v61 = vpop.eup %2273  ;;  %2293 = vpow2.f32 %v1872_v46  ;;  %v1319_v14 = vmul.f32 %v2272_v56, %v3078_v49 }
 0x19c   : > { %v2276_v1 = vpop.eup %2275  ;;  %2295 = vpow2.f32 %v1874_v50  ;;  %v1320_v25 = vmul.f32 %v2274_v61, %v3081_v51 }
 0x19d   : > { %v2278_v6 = vpop.eup %2277  ;;  %2297 = vpow2.f32 %v1875_v55  ;;  %v1036_v60 = vpop.f32.mrb[12].mxu0  ;;  %v1322_v31 = vmul.f32 %v2276_v1, %v3084_v53 }
 0x19e   : > { %v2280_v10 = vpop.eup %2279  ;;  %2299 = vpow2.f32 %v1877_v58  ;;  %v1340_v17 = vmul.f32 %v1316_v3, %v1036_v60  ;;  %v1137_v42 = vpop.f32.mrb[12].mxu1  ;;  %v1321_v32 = vmul.f32 %v2278_v6, %v3086_v54 }
 0x19f   : > { %v1038_v20 = vpop.f32.mrb[13].mxu0  ;;  %v2282_v8 = vpop.eup %2281  ;;  %2301 = vpow2.f32 %v1876_v0  ;;  %v1342_v44 = vmul.f32 %v1318_v11, %v1137_v42  ;;  %v1323_v36 = vmul.f32 %v2280_v10, %v3090_v57 }
 0x1a0   : > { %v1341_v23 = vmul.f32 %v1317_v12, %v1038_v20  ;;  %v1139_v45 = vpop.f32.mrb[13].mxu1  ;;  %v2284_v24 = vpop.eup %2283  ;;  %2303 = vpow2.f32 %v1878_v5  ;;  %v1324_v54 = vmul.f32 %v2282_v8, %v3093_v59 }
 0x1a1   : > { %v1343_v49 = vmul.f32 %v1319_v14, %v1139_v45  ;;  %v2286_v28 = vpop.eup %2285  ;;  %2305 = vpow2.f32 %v1879_v47  ;;  %v1042_v34 = vpop.f32.mrb[14].mxu0  ;;  %v1326_v57 = vmul.f32 %v2284_v24, %v3096_v62 }
 0x1a2   : > { %1498 = vmatprep.mubr.f32.mxu0 %v1341_v23  ;;  %v2288_v35 = vpop.eup %2287  ;;  %2307 = vpow2.f32 %v1881_v16  ;;  %v1344_v37 = vmul.f32 %v1320_v25, %v1042_v34  ;;  %v1143_v38 = vpop.f32.mrb[14].mxu1  ;;  %v1325_v50 = vmul.f32 %v2286_v28, %v3098_v63 }
 0x1a3   : > { %1593 = vmatprep.mubr.f32.mxu1 %v1343_v49  ;;  %v1044_v51 = vpop.f32.mrb[15].mxu0  ;;  %1499 = vmatmul.mubr.f32.vlgmr.msra.gmra.mrb[24].mxu0 %v1340_v17  ;;  %v2290_v39 = vpop.eup %2289  ;;  %2309 = vpow2.f32 %v1880_v22  ;;  %v1346_v40 = vmul.f32 %v1322_v31, %v1143_v38  ;;  %v1327_v58 = vmul.f32 %v2288_v35, %v3102_v2 }
 0x1a4   : > { %v1345_v41 = vmul.f32 %v1321_v32, %v1044_v51  ;;  %v1145_v43 = vpop.f32.mrb[15].mxu1  ;;  %1594 = vmatmul.mubr.f32.vlgmr.msra.gmra.mrb[24].mxu1 %v1342_v44  ;;  %v2292_v53 = vpop.eup %2291  ;;  %2311 = vpow2.f32 %v1882_v27  ;;  %v1328_v12 = vmul.f32 %v2290_v39, %v3105_v4 }
 0x1a5   : > { %v1347_v46 = vmul.f32 %v1323_v36, %v1145_v43  ;;  %v2294_v48 = vpop.eup %2293  ;;  %v1258_v52 = vadd.f32 1.0, %v2292_v53  ;;  %v1048_v55 = vpop.f32.mrb[16].mxu0 }
 0x1a6   : > { %1503 = vmatprep.mubr.f32.mxu0 %v1345_v41  ;;  %v2296_v56 = vpop.eup %2295  ;;  %v1257_v61 = vadd.f32 1.0, %v2294_v48  ;;  %v1348_v0 = vmul.f32 %v1324_v54, %v1048_v55  ;;  %v1149_v1 = vpop.f32.mrb[16].mxu1 }
 0x1a7   : > { %1598 = vmatprep.mubr.f32.mxu1 %v1347_v46  ;;  %v1050_v3 = vpop.f32.mrb[17].mxu0  ;;  %1504 = vmatmul.mubr.f32.gmra.mrb[26].mxu0 %v1344_v37  ;;  %v2298_v59 = vpop.eup %2297  ;;  %2313 = vrcp.f32 %v1258_v52  ;;  %v1259_v5 = vadd.f32 1.0, %v2296_v56  ;;  %v1350_v6 = vmul.f32 %v1326_v57, %v1149_v1 }
 0x1a8   : > { %v1349_v11 = vmul.f32 %v1325_v50, %v1050_v3  ;;  %v1151_v62 = vpop.f32.mrb[17].mxu1  ;;  %1599 = vmatmul.mubr.f32.gmra.mrb[26].mxu1 %v1346_v40  ;;  %v2300_v63 = vpop.eup %2299  ;;  %2315 = vrcp.f32 %v1257_v61  ;;  %v1260_v47 = vadd.f32 1.0, %v2298_v59 }
 0x1a9   : > { %v1351_v60 = vmul.f32 %v1327_v58, %v1151_v62  ;;  %v2302_v2 = vpop.eup %2301  ;;  %2317 = vrcp.f32 %v1259_v5  ;;  %v1262_v10 = vadd.f32 1.0, %v2300_v63  ;;  %v1054_v14 = vpop.f32.mrb[18].mxu0 }
 0x1aa   : > { %1508 = vmatprep.mubr.f32.mxu0 %v1349_v11  ;;  %v2304_v16 = vpop.eup %2303  ;;  %2319 = vrcp.f32 %v1260_v47  ;;  %v1261_v17 = vadd.f32 1.0, %v2302_v2  ;;  %v1352_v42 = vmul.f32 %v1328_v12, %v1054_v14  ;;  %v1155_v20 = vpop.f32.mrb[18].mxu1  ;;  %v1364_v14 = vld [vmem:[#allocation2] sm:$0xff] }
 0x1ab   : > { %1603 = vmatprep.mubr.f32.mxu1 %v1351_v60  ;;  %v1056_v8 = vpop.f32.mrb[19].mxu0  ;;  %1509 = vmatmul.mubr.f32.gmra.mrb[28].mxu0 %v1348_v0  ;;  %v2306_v22 = vpop.eup %2305  ;;  %2321 = vrcp.f32 %v1262_v10  ;;  %v1263_v44 = vadd.f32 1.0, %v2304_v16 }
 0x1ac   : > { %v1157_v4 = vpop.f32.mrb[19].mxu1  ;;  %1604 = vmatmul.mubr.f32.gmra.mrb[28].mxu1 %v1350_v6  ;;  %v2308_v23 = vpop.eup %2307  ;;  %2323 = vrcp.f32 %v1261_v17  ;;  %v1264_v45 = vadd.f32 1.0, %v2306_v22 }
 0x1ad   : > { %v2310_v24 = vpop.eup %2309  ;;  %2325 = vrcp.f32 %v1263_v44  ;;  %v1266_v25 = vadd.f32 1.0, %v2308_v23  ;;  %v1060_v27 = vpop.f32.mrb[20].mxu0 }
 0x1ae   : > { %v2312_v49 = vpop.eup %2311  ;;  %2327 = vrcp.f32 %v1264_v45  ;;  %v1265_v28 = vadd.f32 1.0, %v2310_v24  ;;  %v1161_v31 = vpop.f32.mrb[20].mxu1 }
 0x1af   : > { %v1062_v32 = vpop.f32.mrb[21].mxu0  ;;  %2329 = vrcp.f32 %v1266_v25  ;;  %v1267_v34 = vadd.f32 1.0, %v2312_v49  ;;  %v1163_v35 = vpop.f32.mrb[21].mxu1 }
 0x1b0   : > { %2331 = vrcp.f32 %v1265_v28 }
 0x1b1   : > { %v2314_v36 = vpop.eup %2313  ;;  %2333 = vrcp.f32 %v1267_v34  ;;  %v1066_v37 = vpop.f32.mrb[22].mxu0 }
 0x1b2   : > { %v2316_v38 = vpop.eup %2315  ;;  %v1330_v51 = vmul.f32 %v2314_v36, %v3108_v7  ;;  %v1167_v39 = vpop.f32.mrb[22].mxu1 }
 0x1b3   : > { %v1068_v40 = vpop.f32.mrb[23].mxu0  ;;  %v2318_v41 = vpop.eup %2317  ;;  %v1329_v43 = vmul.f32 %v2316_v38, %v3110_v9 }
 0x1b4   : > { %v1169_v53 = vpop.f32.mrb[23].mxu1  ;;  %v2320_v54 = vpop.eup %2319  ;;  %v1331_v46 = vmul.f32 %v2318_v41, %v3112_v13  ;;  %v1354_v48 = vmul.f32 %v1330_v51, %v1155_v20  ;;  %v1367_v41 = vld [vmem:[#allocation2 + $0x18] sm:$0xff] }
 0x1b5   : > { %v2322_v57 = vpop.eup %2321  ;;  %v1332_v50 = vmul.f32 %v2320_v54, %v3114_v15  ;;  %v1353_v52 = vmul.f32 %v1329_v43, %v1056_v8 }
 0x1b6   : > { %v2324_v55 = vpop.eup %2323  ;;  %v1334_v56 = vmul.f32 %v2322_v57, %v3116_v18  ;;  %v1355_v58 = vmul.f32 %v1331_v46, %v1157_v4  ;;  %v1365_v4 = vld [vmem:[#allocation2 + $0x8] sm:$0xff] }
 0x1b7   : > { %v2326_v61 = vpop.eup %2325  ;;  %v1333_v7 = vmul.f32 %v2324_v55, %v3118_v19  ;;  %v1356_v0 = vmul.f32 %v1332_v50, %v1060_v27  ;;  %1513 = vmatprep.mubr.f32.mxu0 %v1353_v52  ;;  %v1368_v55 = vld [vmem:[#allocation2 + $0x20] sm:$0xff] }
 0x1b8   : > { %v2328_v1 = vpop.eup %2327  ;;  %v1335_v9 = vmul.f32 %v2326_v61, %v3120_v21  ;;  %v1358_v3 = vmul.f32 %v1334_v56, %v1161_v31  ;;  %1608 = vmatprep.mubr.f32.mxu1 %v1355_v58  ;;  %1514 = vmatmul.mubr.f32.gmra.mrb[30].mxu0 %v1352_v42 }
 0x1b9   : > { %v2330_v13 = vpop.eup %2329  ;;  %v1336_v59 = vmul.f32 %v2328_v1, %v3122_v26  ;;  %v1357_v15 = vmul.f32 %v1333_v7, %v1062_v32  ;;  %1609 = vmatmul.mubr.f32.gmra.mrb[30].mxu1 %v1354_v48  ;;  %v1366_v32 = vld [vmem:[#allocation2 + $0x10] sm:$0xff] }
 0x1ba   : > { %v2332_v5 = vpop.eup %2331  ;;  %v1338_v18 = vmul.f32 %v2330_v13, %v3124_v29  ;;  %v1359_v6 = vmul.f32 %v1335_v9, %v1163_v35  ;;  %v1369_v13 = vld [vmem:[#allocation2 + $0x28] sm:$0xff] }
 0x1bb   : > { %v2334_v11 = vpop.eup %2333  ;;  %v1337_v19 = vmul.f32 %v2332_v5, %v3126_v30  ;;  %v1360_v62 = vmul.f32 %v1336_v59, %v1066_v37  ;;  %1518 = vmatprep.mubr.f32.mxu0 %v1357_v15 }
 0x1bc   : > { %v1339_v63 = vmul.f32 %v2334_v11, %v3128_v33  ;;  %v1362_v21 = vmul.f32 %v1338_v18, %v1167_v39  ;;  %1613 = vmatprep.mubr.f32.mxu1 %v1359_v6  ;;  %1519 = vmatmul.mubr.f32.gmra.mrb[32].mxu0 %v1356_v0 }
 0x1bd   : > { %v1361_v12 = vmul.f32 %v1337_v19, %v1068_v40  ;;  %1614 = vmatmul.mubr.f32.gmra.mrb[32].mxu1 %v1358_v3 }
 0x1be   : > { %v1363_v47 = vmul.f32 %v1339_v63, %v1169_v53 }
 0x1bf   : > { %1523 = vmatprep.mubr.f32.mxu0 %v1361_v12 }
 0x1c0   : > { %1618 = vmatprep.mubr.f32.mxu1 %v1363_v47  ;;  %1524 = vmatmul.mubr.f32.gmra.mrb[34].mxu0 %v1360_v62 }
 0x1c1   : > { %1619 = vmatmul.mubr.f32.gmra.mrb[34].mxu1 %v1362_v21 }
 0x276   : > { %v1920_v26 = vpop.f32.mrb[24].mxu0 }
 0x277   : > { %v1970_v29 = vpop.f32.mrb[24].mxu1  ;;  %v1921_v60 = vpop.f32.mrb[25].mxu0 }
 0x278   : > { %v1922_v2 = vadd.f32 %v1921_v60, %v1920_v26  ;;  %v1971_v10 = vpop.f32.mrb[25].mxu1 }
 0x279   : > { %v1972_v30 = vadd.f32 %v1971_v10, %v1970_v29 }
 0x27a   : > { %v1923_v16 = vpop.f32.mrb[26].mxu0 }
 0x27b   : > { %v1596_v17 = vadd.f32 %v1972_v30, %v1922_v2  ;;  %v1973_v33 = vpop.f32.mrb[26].mxu1  ;;  %v1924_v42 = vpop.f32.mrb[27].mxu0 }
 0x27c   : > { %v1925_v20 = vadd.f32 %v1924_v42, %v1923_v16  ;;  %v1974_v8 = vpop.f32.mrb[27].mxu1 }
 0x27d   : > { %v1624_v22 = vadd.f32 %v1596_v17, %v1364_v14  ;;  %v1975_v44 = vadd.f32 %v1974_v8, %v1973_v33 }
 0x27e   : > { %v1926_v23 = vpop.f32.mrb[28].mxu0 }
 0x27f   : > { %1630 = vst [vmem:[#allocation2] sm:$0xff] %v1624_v22  ;;  %v1601_v45 = vadd.f32 %v1975_v44, %v1925_v20  ;;  %v1976_v24 = vpop.f32.mrb[28].mxu1  ;;  %v1927_v25 = vpop.f32.mrb[29].mxu0 }
 0x280   : > { %v1928_v27 = vadd.f32 %v1927_v25, %v1926_v23  ;;  %v1977_v49 = vpop.f32.mrb[29].mxu1 }
 0x281   : > { %v1625_v28 = vadd.f32 %v1601_v45, %v1365_v4  ;;  %v1978_v31 = vadd.f32 %v1977_v49, %v1976_v24 }
 0x283   : > { %1631 = vst [vmem:[#allocation2 + $0x8] sm:$0xff] %v1625_v28  ;;  %v1606_v34 = vadd.f32 %v1978_v31, %v1928_v27 }
 0x285   : > { %v1626_v35 = vadd.f32 %v1606_v34, %v1366_v32 }
 0x287   : > { %1632 = vst [vmem:[#allocation2 + $0x10] sm:$0xff] %v1626_v35 }
 0x28b   : > { %v1929_v36 = vpop.f32.mrb[30].mxu0 }
 0x28c   : > { %v1979_v37 = vpop.f32.mrb[30].mxu1  ;;  %v1930_v38 = vpop.f32.mrb[31].mxu0 }
 0x28d   : > { %v1931_v51 = vadd.f32 %v1930_v38, %v1929_v36  ;;  %v1980_v39 = vpop.f32.mrb[31].mxu1 }
 0x28e   : > { %v1981_v40 = vadd.f32 %v1980_v39, %v1979_v37 }
 0x28f   : > { %v1932_v43 = vpop.f32.mrb[32].mxu0 }
 0x290   : > { %v1611_v53 = vadd.f32 %v1981_v40, %v1931_v51  ;;  %v1982_v54 = vpop.f32.mrb[32].mxu1  ;;  %v1933_v46 = vpop.f32.mrb[33].mxu0 }
 0x291   : > { %v1934_v48 = vadd.f32 %v1933_v46, %v1932_v43  ;;  %v1983_v57 = vpop.f32.mrb[33].mxu1 }
 0x292   : > { %v1627_v50 = vadd.f32 %v1611_v53, %v1367_v41  ;;  %v1984_v52 = vadd.f32 %v1983_v57, %v1982_v54 }
 0x293   : > { %v1935_v56 = vpop.f32.mrb[34].mxu0 }
 0x294   : > { %1633 = vst [vmem:[#allocation2 + $0x18] sm:$0xff] %v1627_v50  ;;  %v1616_v58 = vadd.f32 %v1984_v52, %v1934_v48  ;;  %v1985_v61 = vpop.f32.mrb[34].mxu1  ;;  %v1936_v7 = vpop.f32.mrb[35].mxu0 }
 0x295   : > { %v1937_v0 = vadd.f32 %v1936_v7, %v1935_v56  ;;  %v1986_v1 = vpop.f32.mrb[35].mxu1 }
 0x296   : > { %v1628_v9 = vadd.f32 %v1616_v58, %v1368_v55  ;;  %v1987_v3 = vadd.f32 %v1986_v1, %v1985_v61 }
 0x298   : > { %1634 = vst [vmem:[#allocation2 + $0x20] sm:$0xff] %v1628_v9  ;;  %v1621_v59 = vadd.f32 %v1987_v3, %v1937_v0 }
 0x29a   : > { %v1629_v15 = vadd.f32 %v1621_v59, %v1369_v13 }
 0x29c   : > { %1635 = vst [vmem:[#allocation2 + $0x28] sm:$0xff] %v1629_v15 }
 0x29d PF: > { %v1639_v5 = vld [vmem:[#allocation2] sm:$0xff]  ;;  %v1640_v18 = vld [vmem:[#allocation2 + $0x8] sm:$0xff]  ;;  %v1641_v6 = vld [vmem:[#allocation2 + $0x10] sm:$0xff] }
 0x29e   : > { %1645 = vst [vmem:[%s2805_s16] sm:$0xff] %v1639_v5  ;;  %1646 = vst [vmem:[%s2805_s16 + $0x8] sm:$0xff] %v1640_v18  ;;  %v1642_v11 = vld [vmem:[#allocation2 + $0x18] sm:$0xff] }
 0x29f   : > { %1647 = vst [vmem:[%s2805_s16 + $0x10] sm:$0xff] %v1641_v6  ;;  %v1643_v19 = vld [vmem:[#allocation2 + $0x20] sm:$0xff]  ;;  %1648 = vst [vmem:[%s2805_s16 + $0x18] sm:$0xff] %v1642_v11 }
 0x2a0   : > { %1649 = vst [vmem:[%s2805_s16 + $0x20] sm:$0xff] %v1643_v19 }
 0x2a3   : > { %v1644_v62 = vld [vmem:[#allocation2 + $0x28] sm:$0xff] }
 0x2a4   : > { %1650 = vst [vmem:[%s2805_s16 + $0x28] sm:$0xff] %v1644_v62 }
 0x2a5 PF: > { %s23_s8 = sadd.s32 1, %s2403_s8   ;;  %s3201_s28 = smov %s2383_s0 }
 0x2a6   : > { %p20_p6 = scmp.ge.s32.totalorder %s23_s8, 8   ;;  %s3202_s0 = smov %s2510_s21 }
 0x2a7   : > { %s3203_s29 = smov %s2391_s1  ;;  %s3204_s1 = smov %s2507_s20 }
 0x2a8   : > { %s3205_s30 = smov %s2399_s7  ;;  %s3206_s7 = smov %s3208_s9 }
 0x2a9   :  { %22 = sbr.rel (!%p20_p6) target bundleno = 19 (0x13), region = 143 }

</bundles_post_ra>
